<compile_context>
chip_gen: v6e
topology: v6e:2x2x1
jax: 0.10.0
libtpu: 0.0.40
codegen_flags: <defaults>
</compile_context>

<pallas_src>
import functools

import jax
import jax.numpy as jnp
from jax.experimental import pallas as pl
from jax.experimental.pallas import tpu as pltpu


def _round_up(x, m):
    return (x + m - 1) // m * m


def _dsconv_kernel(x_ref, wdw_ref, s1_ref, b1_ref, wpw_ref, s2_ref, b2_ref,
                   o_ref, *, stride):
    # x_ref:   (1, HP, WP, Cp)   bf16  padded input image (resident per n)
    # wdw_ref: (9, Cp)           f32   depthwise weights, tap-major
    # s1/b1:   (1, Cp)           f32   folded BN1 scale / bias
    # wpw_ref: (Cp, Coutp)       bf16  pointwise (1x1) weights
    # s2/b2:   (1, Coutp)        f32   folded BN2 scale / bias
    # o_ref:   (1, TR, OW, Coutp) f32  output row-tile
    _, TR, OW, Coutp = o_ref.shape
    KH = KW = 3

    r = pl.program_id(1)
    row0 = r * TR * stride                    # first padded-input row of this tile
    span_h = (TR - 1) * stride + 1
    span_w = (OW - 1) * stride + 1

    wdw = wdw_ref[...]                        # (9, Cp), tiny, resident

    # ---- depthwise 3x3 conv: 9 shifted ref-slices, per-channel MAC on the VPU ----
    Cp = wdw.shape[1]
    acc = jnp.zeros((TR, OW, Cp), jnp.float32)
    for kh in range(KH):
        for kw in range(KW):
            patch = x_ref[0, pl.ds(row0 + kh, span_h), pl.ds(kw, span_w), :]
            if stride > 1:
                patch = patch[::stride, ::stride, :]
            acc = acc + patch.astype(jnp.float32) * wdw[kh * KW + kw]

    # ---- BN1 (folded) + ReLU, f32, full-width lanes ----
    h = jnp.maximum(acc * s1_ref[0] + b1_ref[0], 0.0)

    # ---- pointwise 1x1 conv: single lane-dense bf16 MXU matmul, f32 accumulate ----
    h = h.reshape(TR * OW, Cp).astype(jnp.bfloat16)
    y = jnp.dot(h, wpw_ref[...], preferred_element_type=jnp.float32)

    # ---- BN2 (folded) + ReLU, lane-dense store ----
    y = jnp.maximum(y * s2_ref[0] + b2_ref[0], 0.0)
    o_ref[0] = y.reshape(TR, OW, Coutp).astype(o_ref.dtype)


def ds_conv_forward(x_nchw, w_dw, bn1, w_pw, bn2, *,
                    stride=1, eps=1e-5, row_tile=8):
    """Forward of _DSConv (inference BN). Input/weights in PyTorch layouts.

    x_nchw: (N, C, H, W) f32
    w_dw:   (C, 1, 3, 3)   depthwise conv weight (groups=C)
    w_pw:   (Cout, C, 1, 1) pointwise conv weight
    bn1/bn2: (gamma, beta, running_mean, running_var)
    returns: (N, Cout, OH, OW) f32
    """
    g1, be1, m1, v1 = bn1
    g2, be2, m2, v2 = bn2
    N, C, H, W = x_nchw.shape
    Cout = w_pw.shape[0]
    KH = KW = 3
    pad = 1
    HP, WP = H + 2 * pad, W + 2 * pad
    OH = (HP - KH) // stride + 1
    OW = (WP - KW) // stride + 1

    LANE = 128
    Cp = _round_up(C, LANE)
    Coutp = _round_up(Cout, LANE)

    # spatial row tile (divisor of OH, <= row_tile) -> bounded accumulator / VMEM
    TR = min(row_tile, OH)
    while OH % TR:
        TR -= 1

    # ---- host-side glue: layout, zero channel padding, BN folding, dtype casts ----
    x = jnp.transpose(x_nchw, (0, 2, 3, 1)).astype(jnp.float32)          # NHWC
    x = jnp.pad(x, ((0, 0), (pad, pad), (pad, pad), (0, Cp - C)))
    x = x.astype(jnp.bfloat16)

    wdw = jnp.transpose(w_dw.reshape(C, KH * KW), (1, 0)).astype(jnp.float32)  # (9, C)
    wdw = jnp.pad(wdw, ((0, 0), (0, Cp - C)))

    s1 = (g1 / jnp.sqrt(v1 + eps)).astype(jnp.float32)
    b1f = (be1 - m1 * s1).astype(jnp.float32)
    s1 = jnp.pad(s1, (0, Cp - C)).reshape(1, Cp)        # padded lanes -> scale 0
    b1f = jnp.pad(b1f, (0, Cp - C)).reshape(1, Cp)      # padded lanes -> bias 0

    wpw = jnp.transpose(w_pw.reshape(Cout, C), (1, 0)).astype(jnp.float32)     # (C, Cout)
    wpw = jnp.pad(wpw, ((0, Cp - C), (0, Coutp - Cout))).astype(jnp.bfloat16)

    s2 = (g2 / jnp.sqrt(v2 + eps)).astype(jnp.float32)
    b2f = (be2 - m2 * s2).astype(jnp.float32)
    s2 = jnp.pad(s2, (0, Coutp - Cout)).reshape(1, Coutp)
    b2f = jnp.pad(b2f, (0, Coutp - Cout)).reshape(1, Coutp)

    kernel = functools.partial(_dsconv_kernel, stride=stride)

    # VMEM budget (double-buffered blocks + resident weights), capped below
    # the v7x 64 MiB physical limit.
    x_blk = HP * WP * Cp * 2                       # bf16
    o_blk = TR * OW * Coutp * 4                    # f32
    w_bytes = KH * KW * Cp * 4 + 2 * Cp * 4 + Cp * Coutp * 2 + 2 * Coutp * 4
    vmem_limit = int(min(max(2 * (x_blk + o_blk) + w_bytes + (4 << 20),
                             32 << 20), 48 << 20))

    out = pl.pallas_call(
        kernel,
        out_shape=jax.ShapeDtypeStruct((N, OH, OW, Coutp), jnp.float32),
        grid_spec=pltpu.PrefetchScalarGridSpec(
            num_scalar_prefetch=0,
            grid=(N, OH // TR),
            in_specs=[
                pl.BlockSpec((1, HP, WP, Cp), lambda n, r: (n, 0, 0, 0)),
                pl.BlockSpec((KH * KW, Cp), lambda n, r: (0, 0)),
                pl.BlockSpec((1, Cp), lambda n, r: (0, 0)),
                pl.BlockSpec((1, Cp), lambda n, r: (0, 0)),
                pl.BlockSpec((Cp, Coutp), lambda n, r: (0, 0)),
                pl.BlockSpec((1, Coutp), lambda n, r: (0, 0)),
                pl.BlockSpec((1, Coutp), lambda n, r: (0, 0)),
            ],
            out_specs=pl.BlockSpec((1, TR, OW, Coutp), lambda n, r: (n, r, 0, 0)),
        ),
        compiler_params=pltpu.CompilerParams(
            dimension_semantics=("parallel", "parallel"),
            vmem_limit_bytes=vmem_limit,
        ),
    )(x, wdw, s1, b1f, wpw, s2, b2f)

    out = out[..., :Cout]                          # strip padded output channels
    return jnp.transpose(out, (0, 3, 1, 2))        # back to NCHW (module contract)


def _reference(x, w_dw, bn1, w_pw, bn2, *, stride=1, eps=1e-5):
    g1, be1, m1, v1 = bn1
    g2, be2, m2, v2 = bn2
    C = x.shape[1]
    y = jax.lax.conv_general_dilated(
        x.astype(jnp.float32), w_dw.astype(jnp.float32),
        window_strides=(stride, stride), padding=[(1, 1), (1, 1)],
        dimension_numbers=("NCHW", "OIHW", "NCHW"),
        feature_group_count=C)
    s1 = g1 / jnp.sqrt(v1 + eps)
    y = y * s1[None, :, None, None] + (be1 - m1 * s1)[None, :, None, None]
    y = jnp.maximum(y, 0.0)
    y = jax.lax.conv_general_dilated(
        y, w_pw.astype(jnp.float32), window_strides=(1, 1), padding=[(0, 0), (0, 0)],
        dimension_numbers=("NCHW", "OIHW", "NCHW"))
    s2 = g2 / jnp.sqrt(v2 + eps)
    y = y * s2[None, :, None, None] + (be2 - m2 * s2)[None, :, None, None]
    return jnp.maximum(y, 0.0)


if __name__ == "__main__":
    key = jax.random.PRNGKey(0)
    N, C, H, W = 2, 4, 16, 16      # dw_channels = 4
    Cout = 8                       # out_channels = 8
    stride = 1

    ks = jax.random.split(key, 11)
    x = jax.random.normal(ks[0], (N, C, H, W), jnp.float32)
    w_dw = jax.random.normal(ks[1], (C, 1, 3, 3), jnp.float32) * 0.1
    g1 = jax.random.uniform(ks[2], (C,), jnp.float32, 0.5, 1.5)
    be1 = jax.random.normal(ks[3], (C,), jnp.float32) * 0.1
    m1 = jax.random.normal(ks[4], (C,), jnp.float32) * 0.1
    v1 = jax.random.uniform(ks[5], (C,), jnp.float32, 0.5, 1.5)
    w_pw = jax.random.normal(ks[6], (Cout, C, 1, 1), jnp.float32) * 0.1
    g2 = jax.random.uniform(ks[7], (Cout,), jnp.float32, 0.5, 1.5)
    be2 = jax.random.normal(ks[8], (Cout,), jnp.float32) * 0.1
    m2 = jax.random.normal(ks[9], (Cout,), jnp.float32) * 0.1
    v2 = jax.random.uniform(ks[10], (Cout,), jnp.float32, 0.5, 1.5)

    bn1 = (g1, be1, m1, v1)
    bn2 = (g2, be2, m2, v2)

    out = ds_conv_forward(x, w_dw, bn1, w_pw, bn2, stride=stride)
    out = jax.block_until_ready(out)

    ref = _reference(x, w_dw, bn1, w_pw, bn2, stride=stride)
    assert out.shape == ref.shape, (out.shape, ref.shape)
    max_err = float(jnp.max(jnp.abs(out - ref)))
    # bf16 activations / pointwise weights (f32 accumulation) -> loosened tolerance
    assert jnp.allclose(out, ref, atol=2e-2, rtol=2e-2), max_err

    print("KERNEL_OK")
</pallas_src>

<mosaic_0001>
module attributes {stable_mosaic.version = 11 : i64} {
  func.func @_dsconv_kernel(%arg0: i32, %arg1: i32, %arg2: memref<1x18x18x128xbf16, #tpu.memory_space<vmem>>, %arg3: memref<9x128xf32, #tpu.memory_space<vmem>>, %arg4: memref<1x128xf32, #tpu.memory_space<vmem>>, %arg5: memref<1x128xf32, #tpu.memory_space<vmem>>, %arg6: memref<128x128xbf16, #tpu.memory_space<vmem>>, %arg7: memref<1x128xf32, #tpu.memory_space<vmem>>, %arg8: memref<1x128xf32, #tpu.memory_space<vmem>>, %arg9: memref<1x8x16x128xf32, #tpu.memory_space<vmem>>) attributes {dimension_semantics = [#tpu.dimension_semantics<parallel>, #tpu.dimension_semantics<parallel>], iteration_bounds = array<i64: 2, 2>, scalar_prefetch = 0 : i64, scratch_operands = 0 : i64, tpu.core_type = #tpu.core_type<tc>, window_params = [{transform_indices = @transform_0, window_bounds = array<i64: 1, 18, 18, 128>}, {pipeline_mode = #tpu.pipeline_mode<synchronous>, transform_indices = @transform_1, window_bounds = array<i64: 9, 128>}, {pipeline_mode = #tpu.pipeline_mode<synchronous>, transform_indices = @transform_2, window_bounds = array<i64: 1, 128>}, {pipeline_mode = #tpu.pipeline_mode<synchronous>, transform_indices = @transform_3, window_bounds = array<i64: 1, 128>}, {pipeline_mode = #tpu.pipeline_mode<synchronous>, transform_indices = @transform_4, window_bounds = array<i64: 128, 128>}, {pipeline_mode = #tpu.pipeline_mode<synchronous>, transform_indices = @transform_5, window_bounds = array<i64: 1, 128>}, {pipeline_mode = #tpu.pipeline_mode<synchronous>, transform_indices = @transform_6, window_bounds = array<i64: 1, 128>}, {transform_indices = @transform_7, window_bounds = array<i64: 1, 8, 16, 128>}]} {
    %c8_i32 = arith.constant 8 : i32
    %0 = arith.muli %arg1, %c8_i32 : i32
    %c1_i32 = arith.constant 1 : i32
    %1 = arith.muli %0, %c1_i32 : i32
    %c0 = arith.constant 0 : index
    %c0_0 = arith.constant 0 : index
    %2 = vector.load %arg3[%c0, %c0_0] : memref<9x128xf32, #tpu.memory_space<vmem>>, vector<9x128xf32>
    %cst = arith.constant 0.000000e+00 : f32
    %3 = vector.broadcast %cst : f32 to vector<8x16x128xf32>
    %c0_i32 = arith.constant 0 : i32
    %4 = arith.addi %1, %c0_i32 : i32
    %c0_1 = arith.constant 0 : index
    %5 = arith.index_cast %4 : i32 to index
    %c0_2 = arith.constant 0 : index
    %c0_3 = arith.constant 0 : index
    %6 = vector.load %arg2[%c0_1, %5, %c0_2, %c0_3] : memref<1x18x18x128xbf16, #tpu.memory_space<vmem>>, vector<1x8x16x128xbf16>
    %7 = vector.shape_cast %6 : vector<1x8x16x128xbf16> to vector<8x16x128xbf16>
    %8 = arith.extf %7 : vector<8x16x128xbf16> to vector<8x16x128xf32>
    %9 = vector.extract_strided_slice %2 {offsets = [0, 0], sizes = [1, 128], strides = [1, 1]} : vector<9x128xf32> to vector<1x128xf32>
    %10 = vector.shape_cast %9 : vector<1x128xf32> to vector<128xf32>
    %11 = vector.shape_cast %10 : vector<128xf32> to vector<1x1x128xf32>
    %12 = vector.broadcast %11 : vector<1x1x128xf32> to vector<8x16x128xf32>
    %13 = arith.mulf %8, %12 : vector<8x16x128xf32>
    %14 = arith.addf %3, %13 : vector<8x16x128xf32>
    %c0_i32_4 = arith.constant 0 : i32
    %15 = arith.addi %1, %c0_i32_4 : i32
    %c0_5 = arith.constant 0 : index
    %16 = arith.index_cast %15 : i32 to index
    %c1 = arith.constant 1 : index
    %c0_6 = arith.constant 0 : index
    %17 = vector.load %arg2[%c0_5, %16, %c1, %c0_6] : memref<1x18x18x128xbf16, #tpu.memory_space<vmem>>, vector<1x8x16x128xbf16>
    %18 = vector.shape_cast %17 : vector<1x8x16x128xbf16> to vector<8x16x128xbf16>
    %19 = arith.extf %18 : vector<8x16x128xbf16> to vector<8x16x128xf32>
    %20 = vector.extract_strided_slice %2 {offsets = [1, 0], sizes = [1, 128], strides = [1, 1]} : vector<9x128xf32> to vector<1x128xf32>
    %21 = vector.shape_cast %20 : vector<1x128xf32> to vector<128xf32>
    %22 = vector.shape_cast %21 : vector<128xf32> to vector<1x1x128xf32>
    %23 = vector.broadcast %22 : vector<1x1x128xf32> to vector<8x16x128xf32>
    %24 = arith.mulf %19, %23 : vector<8x16x128xf32>
    %25 = arith.addf %14, %24 : vector<8x16x128xf32>
    %c0_i32_7 = arith.constant 0 : i32
    %26 = arith.addi %1, %c0_i32_7 : i32
    %c0_8 = arith.constant 0 : index
    %27 = arith.index_cast %26 : i32 to index
    %c2 = arith.constant 2 : index
    %c0_9 = arith.constant 0 : index
    %28 = vector.load %arg2[%c0_8, %27, %c2, %c0_9] : memref<1x18x18x128xbf16, #tpu.memory_space<vmem>>, vector<1x8x16x128xbf16>
    %29 = vector.shape_cast %28 : vector<1x8x16x128xbf16> to vector<8x16x128xbf16>
    %30 = arith.extf %29 : vector<8x16x128xbf16> to vector<8x16x128xf32>
    %31 = vector.extract_strided_slice %2 {offsets = [2, 0], sizes = [1, 128], strides = [1, 1]} : vector<9x128xf32> to vector<1x128xf32>
    %32 = vector.shape_cast %31 : vector<1x128xf32> to vector<128xf32>
    %33 = vector.shape_cast %32 : vector<128xf32> to vector<1x1x128xf32>
    %34 = vector.broadcast %33 : vector<1x1x128xf32> to vector<8x16x128xf32>
    %35 = arith.mulf %30, %34 : vector<8x16x128xf32>
    %36 = arith.addf %25, %35 : vector<8x16x128xf32>
    %c1_i32_10 = arith.constant 1 : i32
    %37 = arith.addi %1, %c1_i32_10 : i32
    %c0_11 = arith.constant 0 : index
    %38 = arith.index_cast %37 : i32 to index
    %c0_12 = arith.constant 0 : index
    %c0_13 = arith.constant 0 : index
    %39 = vector.load %arg2[%c0_11, %38, %c0_12, %c0_13] : memref<1x18x18x128xbf16, #tpu.memory_space<vmem>>, vector<1x8x16x128xbf16>
    %40 = vector.shape_cast %39 : vector<1x8x16x128xbf16> to vector<8x16x128xbf16>
    %41 = arith.extf %40 : vector<8x16x128xbf16> to vector<8x16x128xf32>
    %42 = vector.extract_strided_slice %2 {offsets = [3, 0], sizes = [1, 128], strides = [1, 1]} : vector<9x128xf32> to vector<1x128xf32>
    %43 = vector.shape_cast %42 : vector<1x128xf32> to vector<128xf32>
    %44 = vector.shape_cast %43 : vector<128xf32> to vector<1x1x128xf32>
    %45 = vector.broadcast %44 : vector<1x1x128xf32> to vector<8x16x128xf32>
    %46 = arith.mulf %41, %45 : vector<8x16x128xf32>
    %47 = arith.addf %36, %46 : vector<8x16x128xf32>
    %c1_i32_14 = arith.constant 1 : i32
    %48 = arith.addi %1, %c1_i32_14 : i32
    %c0_15 = arith.constant 0 : index
    %49 = arith.index_cast %48 : i32 to index
    %c1_16 = arith.constant 1 : index
    %c0_17 = arith.constant 0 : index
    %50 = vector.load %arg2[%c0_15, %49, %c1_16, %c0_17] : memref<1x18x18x128xbf16, #tpu.memory_space<vmem>>, vector<1x8x16x128xbf16>
    %51 = vector.shape_cast %50 : vector<1x8x16x128xbf16> to vector<8x16x128xbf16>
    %52 = arith.extf %51 : vector<8x16x128xbf16> to vector<8x16x128xf32>
    %53 = vector.extract_strided_slice %2 {offsets = [4, 0], sizes = [1, 128], strides = [1, 1]} : vector<9x128xf32> to vector<1x128xf32>
    %54 = vector.shape_cast %53 : vector<1x128xf32> to vector<128xf32>
    %55 = vector.shape_cast %54 : vector<128xf32> to vector<1x1x128xf32>
    %56 = vector.broadcast %55 : vector<1x1x128xf32> to vector<8x16x128xf32>
    %57 = arith.mulf %52, %56 : vector<8x16x128xf32>
    %58 = arith.addf %47, %57 : vector<8x16x128xf32>
    %c1_i32_18 = arith.constant 1 : i32
    %59 = arith.addi %1, %c1_i32_18 : i32
    %c0_19 = arith.constant 0 : index
    %60 = arith.index_cast %59 : i32 to index
    %c2_20 = arith.constant 2 : index
    %c0_21 = arith.constant 0 : index
    %61 = vector.load %arg2[%c0_19, %60, %c2_20, %c0_21] : memref<1x18x18x128xbf16, #tpu.memory_space<vmem>>, vector<1x8x16x128xbf16>
    %62 = vector.shape_cast %61 : vector<1x8x16x128xbf16> to vector<8x16x128xbf16>
    %63 = arith.extf %62 : vector<8x16x128xbf16> to vector<8x16x128xf32>
    %64 = vector.extract_strided_slice %2 {offsets = [5, 0], sizes = [1, 128], strides = [1, 1]} : vector<9x128xf32> to vector<1x128xf32>
    %65 = vector.shape_cast %64 : vector<1x128xf32> to vector<128xf32>
    %66 = vector.shape_cast %65 : vector<128xf32> to vector<1x1x128xf32>
    %67 = vector.broadcast %66 : vector<1x1x128xf32> to vector<8x16x128xf32>
    %68 = arith.mulf %63, %67 : vector<8x16x128xf32>
    %69 = arith.addf %58, %68 : vector<8x16x128xf32>
    %c2_i32 = arith.constant 2 : i32
    %70 = arith.addi %1, %c2_i32 : i32
    %c0_22 = arith.constant 0 : index
    %71 = arith.index_cast %70 : i32 to index
    %c0_23 = arith.constant 0 : index
    %c0_24 = arith.constant 0 : index
    %72 = vector.load %arg2[%c0_22, %71, %c0_23, %c0_24] : memref<1x18x18x128xbf16, #tpu.memory_space<vmem>>, vector<1x8x16x128xbf16>
    %73 = vector.shape_cast %72 : vector<1x8x16x128xbf16> to vector<8x16x128xbf16>
    %74 = arith.extf %73 : vector<8x16x128xbf16> to vector<8x16x128xf32>
    %75 = vector.extract_strided_slice %2 {offsets = [6, 0], sizes = [1, 128], strides = [1, 1]} : vector<9x128xf32> to vector<1x128xf32>
    %76 = vector.shape_cast %75 : vector<1x128xf32> to vector<128xf32>
    %77 = vector.shape_cast %76 : vector<128xf32> to vector<1x1x128xf32>
    %78 = vector.broadcast %77 : vector<1x1x128xf32> to vector<8x16x128xf32>
    %79 = arith.mulf %74, %78 : vector<8x16x128xf32>
    %80 = arith.addf %69, %79 : vector<8x16x128xf32>
    %c2_i32_25 = arith.constant 2 : i32
    %81 = arith.addi %1, %c2_i32_25 : i32
    %c0_26 = arith.constant 0 : index
    %82 = arith.index_cast %81 : i32 to index
    %c1_27 = arith.constant 1 : index
    %c0_28 = arith.constant 0 : index
    %83 = vector.load %arg2[%c0_26, %82, %c1_27, %c0_28] : memref<1x18x18x128xbf16, #tpu.memory_space<vmem>>, vector<1x8x16x128xbf16>
    %84 = vector.shape_cast %83 : vector<1x8x16x128xbf16> to vector<8x16x128xbf16>
    %85 = arith.extf %84 : vector<8x16x128xbf16> to vector<8x16x128xf32>
    %86 = vector.extract_strided_slice %2 {offsets = [7, 0], sizes = [1, 128], strides = [1, 1]} : vector<9x128xf32> to vector<1x128xf32>
    %87 = vector.shape_cast %86 : vector<1x128xf32> to vector<128xf32>
    %88 = vector.shape_cast %87 : vector<128xf32> to vector<1x1x128xf32>
    %89 = vector.broadcast %88 : vector<1x1x128xf32> to vector<8x16x128xf32>
    %90 = arith.mulf %85, %89 : vector<8x16x128xf32>
    %91 = arith.addf %80, %90 : vector<8x16x128xf32>
    %c2_i32_29 = arith.constant 2 : i32
    %92 = arith.addi %1, %c2_i32_29 : i32
    %c0_30 = arith.constant 0 : index
    %93 = arith.index_cast %92 : i32 to index
    %c2_31 = arith.constant 2 : index
    %c0_32 = arith.constant 0 : index
    %94 = vector.load %arg2[%c0_30, %93, %c2_31, %c0_32] : memref<1x18x18x128xbf16, #tpu.memory_space<vmem>>, vector<1x8x16x128xbf16>
    %95 = vector.shape_cast %94 : vector<1x8x16x128xbf16> to vector<8x16x128xbf16>
    %96 = arith.extf %95 : vector<8x16x128xbf16> to vector<8x16x128xf32>
    %97 = vector.extract_strided_slice %2 {offsets = [8, 0], sizes = [1, 128], strides = [1, 1]} : vector<9x128xf32> to vector<1x128xf32>
    %98 = vector.shape_cast %97 : vector<1x128xf32> to vector<128xf32>
    %99 = vector.shape_cast %98 : vector<128xf32> to vector<1x1x128xf32>
    %100 = vector.broadcast %99 : vector<1x1x128xf32> to vector<8x16x128xf32>
    %101 = arith.mulf %96, %100 : vector<8x16x128xf32>
    %102 = arith.addf %91, %101 : vector<8x16x128xf32>
    %c0_33 = arith.constant 0 : index
    %c0_34 = arith.constant 0 : index
    %103 = vector.load %arg4[%c0_33, %c0_34] : memref<1x128xf32, #tpu.memory_space<vmem>>, vector<1x128xf32>
    %104 = vector.shape_cast %103 : vector<1x128xf32> to vector<128xf32>
    %105 = vector.shape_cast %104 : vector<128xf32> to vector<1x1x128xf32>
    %106 = vector.broadcast %105 : vector<1x1x128xf32> to vector<8x16x128xf32>
    %107 = arith.mulf %102, %106 : vector<8x16x128xf32>
    %c0_35 = arith.constant 0 : index
    %c0_36 = arith.constant 0 : index
    %108 = vector.load %arg5[%c0_35, %c0_36] : memref<1x128xf32, #tpu.memory_space<vmem>>, vector<1x128xf32>
    %109 = vector.shape_cast %108 : vector<1x128xf32> to vector<128xf32>
    %110 = vector.shape_cast %109 : vector<128xf32> to vector<1x1x128xf32>
    %111 = vector.broadcast %110 : vector<1x1x128xf32> to vector<8x16x128xf32>
    %112 = arith.addf %107, %111 : vector<8x16x128xf32>
    %cst_37 = arith.constant 0.000000e+00 : f32
    %113 = vector.broadcast %cst_37 : f32 to vector<8x16x128xf32>
    %114 = arith.maximumf %112, %113 : vector<8x16x128xf32>
    %115 = vector.shape_cast %114 : vector<8x16x128xf32> to vector<128x128xf32>
    %116 = arith.truncf %115 : vector<128x128xf32> to vector<128x128xbf16>
    %c0_38 = arith.constant 0 : index
    %c0_39 = arith.constant 0 : index
    %117 = vector.load %arg6[%c0_38, %c0_39] : memref<128x128xbf16, #tpu.memory_space<vmem>>, vector<128x128xbf16>
    %cst_40 = arith.constant dense<0.000000e+00> : vector<128x128xf32>
    %118 = tpu.matmul %116, %117, %cst_40 {dimension_numbers = #tpu.dot_dimension_numbers<[1], [0], [0], [1], [0, 0, 1, 1], [], []>} : vector<128x128xbf16>, vector<128x128xbf16>, vector<128x128xf32> -> vector<128x128xf32>
    %c0_41 = arith.constant 0 : index
    %c0_42 = arith.constant 0 : index
    %119 = vector.load %arg7[%c0_41, %c0_42] : memref<1x128xf32, #tpu.memory_space<vmem>>, vector<1x128xf32>
    %120 = vector.shape_cast %119 : vector<1x128xf32> to vector<128xf32>
    %121 = vector.shape_cast %120 : vector<128xf32> to vector<1x128xf32>
    %122 = vector.broadcast %121 : vector<1x128xf32> to vector<128x128xf32>
    %123 = arith.mulf %118, %122 : vector<128x128xf32>
    %c0_43 = arith.constant 0 : index
    %c0_44 = arith.constant 0 : index
    %124 = vector.load %arg8[%c0_43, %c0_44] : memref<1x128xf32, #tpu.memory_space<vmem>>, vector<1x128xf32>
    %125 = vector.shape_cast %124 : vector<1x128xf32> to vector<128xf32>
    %126 = vector.shape_cast %125 : vector<128xf32> to vector<1x128xf32>
    %127 = vector.broadcast %126 : vector<1x128xf32> to vector<128x128xf32>
    %128 = arith.addf %123, %127 : vector<128x128xf32>
    %cst_45 = arith.constant 0.000000e+00 : f32
    %129 = vector.broadcast %cst_45 : f32 to vector<128x128xf32>
    %130 = arith.maximumf %128, %129 : vector<128x128xf32>
    %131 = vector.shape_cast %130 : vector<128x128xf32> to vector<8x16x128xf32>
    %c0_46 = arith.constant 0 : index
    %c0_47 = arith.constant 0 : index
    %c0_48 = arith.constant 0 : index
    %c0_49 = arith.constant 0 : index
    %132 = vector.load %arg9[%c0_46, %c0_47, %c0_48, %c0_49] : memref<1x8x16x128xf32, #tpu.memory_space<vmem>>, vector<1x8x16x128xf32>
    %133 = vector.shape_cast %132 : vector<1x8x16x128xf32> to vector<8x16x128xf32>
    %134 = vector.shape_cast %131 : vector<8x16x128xf32> to vector<1x8x16x128xf32>
    tpu.vector_store %arg9[%c0_46, %c0_47, %c0_48, %c0_49], %134 {strides = array<i32>} : memref<1x8x16x128xf32, #tpu.memory_space<vmem>>, vector<1x8x16x128xf32>,
    return
  }
  func.func @transform_0(%arg0: i32, %arg1: i32) -> (i32, i32, i32, i32) {
    %c0_i32 = arith.constant 0 : i32
    %c0_i32_0 = arith.constant 0 : i32
    %c0_i32_1 = arith.constant 0 : i32
    %c0_i32_2 = arith.constant 0 : i32
    return %arg0, %c0_i32, %c0_i32_0, %c0_i32_1 : i32, i32, i32, i32
  }
  func.func @transform_1(%arg0: i32, %arg1: i32) -> (i32, i32) {
    %c0_i32 = arith.constant 0 : i32
    %c0_i32_0 = arith.constant 0 : i32
    %c0_i32_1 = arith.constant 0 : i32
    return %c0_i32, %c0_i32_0 : i32, i32
  }
  func.func @transform_2(%arg0: i32, %arg1: i32) -> (i32, i32) {
    %c0_i32 = arith.constant 0 : i32
    %c0_i32_0 = arith.constant 0 : i32
    %c0_i32_1 = arith.constant 0 : i32
    return %c0_i32, %c0_i32_0 : i32, i32
  }
  func.func @transform_3(%arg0: i32, %arg1: i32) -> (i32, i32) {
    %c0_i32 = arith.constant 0 : i32
    %c0_i32_0 = arith.constant 0 : i32
    %c0_i32_1 = arith.constant 0 : i32
    return %c0_i32, %c0_i32_0 : i32, i32
  }
  func.func @transform_4(%arg0: i32, %arg1: i32) -> (i32, i32) {
    %c0_i32 = arith.constant 0 : i32
    %c0_i32_0 = arith.constant 0 : i32
    %c0_i32_1 = arith.constant 0 : i32
    return %c0_i32, %c0_i32_0 : i32, i32
  }
  func.func @transform_5(%arg0: i32, %arg1: i32) -> (i32, i32) {
    %c0_i32 = arith.constant 0 : i32
    %c0_i32_0 = arith.constant 0 : i32
    %c0_i32_1 = arith.constant 0 : i32
    return %c0_i32, %c0_i32_0 : i32, i32
  }
  func.func @transform_6(%arg0: i32, %arg1: i32) -> (i32, i32) {
    %c0_i32 = arith.constant 0 : i32
    %c0_i32_0 = arith.constant 0 : i32
    %c0_i32_1 = arith.constant 0 : i32
    return %c0_i32, %c0_i32_0 : i32, i32
  }
  func.func @transform_7(%arg0: i32, %arg1: i32) -> (i32, i32, i32, i32) {
    %c0_i32 = arith.constant 0 : i32
    %c0_i32_0 = arith.constant 0 : i32
    %c0_i32_1 = arith.constant 0 : i32
    return %arg0, %arg1, %c0_i32, %c0_i32_0 : i32, i32, i32, i32
  }
}

</mosaic_0001>

<bundles_post_ra>
// kernel: tpu_custom_call.1
= control target key start
LH: loop header
LB: loop body
LE: loop exit
PB: predicated region body
PF: predicated region fallthrough
CT: control target
= control target key end

     0   :  { %12 = vsyncpa [#allocation3], 0  ;;  %s2966_s0 = inlined_call_operand.vmem [shape: bf16[2,18,18,128], index: 0, kind: input, shape index: {}]   ;;  %s2967_s1 = inlined_call_operand.vmem [shape: f32[9,128], index: 1, kind: input, shape index: {}]   ;;  %s2968_s2 = inlined_call_operand.vmem [shape: f32[1,128], index: 2, kind: input, shape index: {}]   ;;  %s2969_s3 = inlined_call_operand.vmem [shape: f32[1,128], index: 3, kind: input, shape index: {}]   ;;  %s2970_s4 = inlined_call_operand.vmem [shape: bf16[128,128], index: 4, kind: input, shape index: {}]   ;;  %s2971_s5 = inlined_call_operand.vmem [shape: f32[1,128], index: 5, kind: input, shape index: {}]   ;;  %s2972_s6 = inlined_call_operand.vmem [shape: f32[1,128], index: 6, kind: input, shape index: {}]   ;;  %s2973_s7 = inlined_call_operand.hbm [shape: f32[2,16,16,128], index: 7, kind: output, shape index: {}]  }
   0x1   :  { %14 = vsyncpa [#allocation3 + $0x1], 0  ;;  %s2210_s24 = smov 0   ;;  %s2212_s25 = smov 0  }
   0x2   :  { %s2214_s26 = smov 0   ;;  %s2216_s27 = smov 0  }
   0x3   :  { %s2218_s28 = smov 0   ;;  %s2220_s29 = smov 0  }
   0x4   :  { %s2222_s30 = smov 0   ;;  %s2224_s8 = smov 0  }
   0x5 LB: > { %s1765_s9 = sadd.s32 4294967295, %s2165_s8   ;;  %s1766_s10 = sadd.s32 4294967294, %s2165_s8   ;;  %s2165_s8 = sphi %s2224_s8, %s20_s8   ;;  %s2161_s30 = sphi %s2222_s30, %s2982_s30   ;;  %s2157_s29 = sphi %s2220_s29, %s2981_s29   ;;  %s2153_s28 = sphi %s2218_s28, %s2980_s28   ;;  %s2149_s27 = sphi %s2216_s27, %s2979_s27   ;;  %s2145_s26 = sphi %s2214_s26, %s2978_s26   ;;  %s2141_s25 = sphi %s2212_s25, %s2977_s25   ;;  %s2137_s24 = sphi %s2210_s24, %s2976_s24  }
   0x6   : > { %s29_s11 = sadd.s32 1, %s2157_s29  ;;  %s32_s12 = sadd.s32 1, %s2161_s30 }
   0x7   : > { %p30_p0 = scmp.ge.s32.totalorder %s29_s11, 2  ;;  %p203_p1 = scmp.ne.s32.totalorder %s2145_s26, %s2141_s25 }
   0x8   : > { %p204_p2 = scmp.eq.s32.totalorder %s1765_s9, 3  ;;  %p209_p5 = scmp.ne.s32.totalorder %s2141_s25, %s2137_s24 }
   0x9   : > { %s2984_s11 = smov (%p30_p0, %s29_s11), 0  ;;  %s2986_s12 = smov (!%p30_p0, %s32_s12), %s2161_s30 }
   0xa   : > { %s189_s13 = ssub.s32 %s2157_s29, %s2984_s11  ;;  %p2261_p3 = por %p204_p2, %p203_p1 }
   0xb   : > { %p34_p4 = scmp.ge.s32.totalorder %s2986_s12, 2  ;;  %p210_p6 = scmp.eq.s32.totalorder %s1766_s10, 3 }
   0xc   : > { %p1769_p7 = scmp.ge.s32.totalorder %s2165_s8, 1  ;;  %p254_p9 = scmp.lt.s32.totalorder %s2165_s8, 5 }
   0xd   : > { %s2988_s12 = smov (%p34_p4, %s2986_s12), 0  ;;  %p2270_p8 = por %p210_p6, %p209_p5 }
   0xe   : > { %s188_s16 = ssub.s32 %s2161_s30, %s2988_s12  ;;  %s193_s17 = sadd.s32 1, %s2145_s26 }
   0xf   : > { %s190_s18 = sor.u32 %s189_s13, %s188_s16  ;;  %p255_p10 = pnand %p1769_p7, %p254_p9 }
  0x10   : > { %p191_p11 = scmp.eq.s32.totalorder %s190_s18, 0  ;;  %p286_p12 = scmp.lt.s32.totalorder (!%p255_p10), %s2153_s28, 1 }
  0x11   : > { %258 = sbr.rel (%p255_p10) target bundleno = 434 (0x1b2), region = 48  ;;  %s1864_s16 = sshll.u32 (!%p255_p10), %s2149_s27, 4 }
  0x12   : > { %s2279_s19 = scalar_select %p191_p11, %s2145_s26, %s193_s17  }
  0x13   : > { %s1863_s10 = smul.u32 (!%p255_p10), 96, %s2149_s27 }
  0x16   : > { %v2062_v0 = vld [vmem:[%s2970_s4 + $0x38] sm:$0xff]   ;;  %v331_v1 = vlaneseq  ;;  %v2063_v2 = vld [vmem:[%s2970_s4 + $0x30] sm:$0xff]   ;;  %s287_s9 = scalar_select %p286_p12, %s2153_s28, 1  ;;  %v2064_v4 = vld [vmem:[%s2970_s4 + $0x28] sm:$0xff]   ;;  %vm435_vm0 = vcmask 1046528   ;;  %vm576_vm1 = vcmask 1045504  }
  0x17   : > { %1940 = vmatprep.subr.bf16.mxu0 %v2062_v0  ;;  %1972 = vmatprep.subr.bf16.mxu1 %v2062_v0  ;;  %v2065_v7 = vld [vmem:[%s2970_s4 + $0x20] sm:$0xff]   ;;  %v2066_v27 = vld [vmem:[%s2970_s4 + $0x18] sm:$0xff]   ;;  %v2067_v46 = vld [vmem:[%s2970_s4 + $0x10] sm:$0xff]  }
  0x18   : > { %1941 = vmatpush3.bf16.msra.mxu0 %v2062_v0  ;;  %1980 = vmatpush3.bf16.msra.mxu1 %v2062_v0  ;;  %v2290_v3 = vshrl.u32 %v331_v1, 7  ;;  %s1988_s17 = smul.u32 216, %s287_s9  ;;  %v2308_v8 = vld [vmem:[%s2967_s1] sm:$0xff]  ;;  %v2068_v0 = vld [vmem:[%s2970_s4 + $0x8] sm:$0xff]  }
  0x19   : > { %1942 = vmatprep.subr.bf16.mxu0 %v2063_v2  ;;  %1973 = vmatprep.subr.bf16.mxu1 %v2063_v2 }
  0x1a   : > { %v333_v5 = vsub.s32 0, %v2290_v3  ;;  %s290_s21 = scalar_lea.vmem %s2966_s0, %s1988_s17  ;;  %v385_v6 = vsub.s32 1, %v2290_v3  ;;  %v526_v10 = vsub.s32 2, %v2290_v3  ;;  %v687_v31 = vsub.s32 3, %v2290_v3 }
  0x1b   : > { %s2300_s22 = scalar_lea.vmem %s290_s21, %s1863_s10  ;;  %v739_v43 = vsub.s32 4, %v2290_v3  ;;  %v879_v50 = vsub.s32 5, %v2290_v3  ;;  %v1039_v63 = vsub.s32 6, %v2290_v3  ;;  %s1859_s10 = sshll.u32 %s2153_s28, 5 }
  0x1c   : > { %1943 = vmatpush3.bf16.msra.mxu0 %v2063_v2  ;;  %1981 = vmatpush3.bf16.msra.mxu1 %v2063_v2  ;;  %v1866_v9 = vld [vmem:[%s2300_s22] sm:$0xff]   ;;  %v2313_v13 = vrot.slane %v2308_v8, %v333_v5  ;;  %v367_v14 = vld [vmem:[%s2300_s22 + $0x8] sm:$0x1]  ;;  %v2317_v15 = vrot.slane %v2308_v8, %v385_v6  ;;  %v1777_v17 = vld [vmem:[%s2300_s22 + $0xc] sm:$0xff]   ;;  %v2322_v20 = vrot.slane %v2308_v8, %v526_v10  ;;  %s1676_s17 = sadd.s32 %s1864_s16, %s1859_s10  ;;  %s2167_s16 = smov [#allocation2]  }
  0x1d   : > { %1944 = vmatprep.subr.bf16.mxu0 %v2064_v4  ;;  %1974 = vmatprep.subr.bf16.mxu1 %v2064_v4  ;;  %v1867_v11 = vunpack.c.l.bf16 %v1866_v9  ;;  %v1868_v12 = vunpack.c.h.bf16 %v1866_v9  ;;  %v508_v16 = vld [vmem:[%s2300_s22] sm:$0xe]  ;;  %v375_v18 = vunpack.c.l.bf16 %v367_v14  ;;  %v669_v21 = vunpack.c.l.bf16 %v1777_v17  ;;  %v2325_v22 = vld [vmem:[%s2300_s22 + $0x14] sm:$0x1]  ;;  %v1801_v32 = vld [vmem:[%s2300_s22 + $0xc] sm:$0xe] }
  0x1e   : > { %v516_v19 = vunpack.c.l.bf16 %v508_v16  ;;  %v670_v26 = vunpack.c.h.bf16 %v1777_v17  ;;  %v729_v36 = vunpack.c.l.bf16 %v2325_v22  ;;  %v2342_v40 = vrot.slane %v2308_v8, %v687_v31  ;;  %v1920_v45 = vld [vmem:[%s2300_s22 + $0x18] sm:$0xff]   ;;  %v2356_v55 = vld [vmem:[%s2300_s22 + $0x20] sm:$0x1]  ;;  %s1860_s27 = sshll.u32 %s1676_s17, 7  ;;  %s2077_s10 = sshll.u32 %s2167_s16, 4  ;;  %s2078_s10 = int_to_ptr.vmem [resolvable:$false] %s2077_s10 }
  0x1f   : > { %v335_v23 = vmul.f32 %v1867_v11, %v2313_v13  ;;  %v336_v24 = vmul.f32 %v1868_v12, %v2313_v13  ;;  %v387_v25 = vmul.f32 %v1867_v11, %v2317_v15  ;;  %v388_v28 = vmul.f32 %v1868_v12, %v2317_v15  ;;  %v1835_v11 = vld [vmem:[%s2300_s22 + $0x18] sm:$0xe]  ;;  %s2907_s21 = scalar_lea.hbm %s2973_s7, %s1860_s27  ;;  %s2079_s17 = scalar_lea.vmem %s2078_s10, 4096 }
  0x20   : > { %1945 = vmatpush3.bf16.msra.mxu0 %v2064_v4  ;;  %1982 = vmatpush3.bf16.msra.mxu1 %v2064_v4  ;;  %v389_v29 = vmul.f32 %v2317_v15, %v375_v18  ;;  %v528_v30 = vmul.f32 %v2322_v20, %v516_v19  ;;  %v529_v34 = vmul.f32 %v1868_v12, %v2322_v20  ;;  %v869_v44 = vunpack.c.l.bf16 %v1801_v32 }
  0x21   : > { %1946 = vmatprep.subr.bf16.mxu0 %v2065_v7  ;;  %1975 = vmatprep.subr.bf16.mxu1 %v2065_v7  ;;  %v436_v33 = vrot.slane %v387_v25, 1  ;;  %v530_v35 = vmul.f32 %v2322_v20, %v375_v18  ;;  %v437_v37 = vrot.slane %v388_v28, 1  ;;  %v689_v49 = vmul.f32 %v2342_v40, %v669_v21  ;;  %v2384_v18 = vld [vmem:[%s2967_s1 + $0x8] ss:$0 sm:$0xff] }
  0x22   : > { %v439_v38 = vrot.slane %v389_v29, 1  ;;  %v577_v39 = vrot.slane %v528_v30, 2  ;;  %v578_v41 = vrot.slane %v529_v34, 2  ;;  %v690_v56 = vmul.f32 %v2342_v40, %v670_v26  ;;  %v1914_v29 = vld [vmem:[%s2300_s22 + $0x30] sm:$0xff]  }
  0x23   : > { %v580_v42 = vrot.slane %v530_v35, 2  ;;  %v438_v47 = vsel %vm435_vm0, %v436_v33, %v437_v37  ;;  %v2360_v57 = vrot.slane %v2308_v8, %v739_v43  ;;  %v2363_v58 = vrot.slane %v2308_v8, %v879_v50 }
  0x24   : > { %1947 = vmatpush3.bf16.msra.mxu0 %v2065_v7  ;;  %1983 = vmatpush3.bf16.msra.mxu1 %v2065_v7  ;;  %v440_v48 = vsel %vm435_vm0, %v437_v37, %v439_v38  ;;  %v492_v51 = vadd.f32 %v438_v47, %v335_v23  ;;  %v579_v53 = vsel %vm576_vm1, %v577_v39, %v578_v41  ;;  %v2365_v59 = vunpack.c.l.bf16 %v1920_v45 }
  0x25   : > { %1948 = vmatprep.subr.bf16.mxu0 %v2066_v27  ;;  %1976 = vmatprep.subr.bf16.mxu1 %v2066_v27  ;;  %v493_v52 = vadd.f32 %v440_v48, %v336_v24  ;;  %v581_v54 = vsel %vm576_vm1, %v578_v41, %v580_v42  ;;  %v2367_v62 = vunpack.c.h.bf16 %v1920_v45  ;;  %v741_v1 = vmul.f32 %v2360_v57, %v669_v21  ;;  %v2069_v24 = vld [vmem:[%s2970_s4] sm:$0xff]   ;;  %v371_v45 = vld [vmem:[%s2300_s22 + $0x38] sm:$0x1] }
  0x26   : > { %v633_v60 = vadd.f32 %v579_v53, %v492_v51  ;;  %v742_v2 = vmul.f32 %v2360_v57, %v670_v26  ;;  %v743_v4 = vmul.f32 %v2360_v57, %v729_v36  ;;  %v1081_v5 = vunpack.c.l.bf16 %v2356_v55 }
  0x27   : > { %v634_v61 = vadd.f32 %v581_v54, %v493_v52  ;;  %v881_v9 = vmul.f32 %v2363_v58, %v869_v44  ;;  %v882_v10 = vmul.f32 %v2363_v58, %v670_v26  ;;  %v789_v12 = vrot.slane %v741_v1, 1 }
  0x28   : > { %1949 = vmatpush3.bf16.msra.mxu0 %v2066_v27  ;;  %1984 = vmatpush3.bf16.msra.mxu1 %v2066_v27  ;;  %v705_v6 = vadd.f32 %v689_v49, %v633_v60  ;;  %v790_v14 = vrot.slane %v742_v2, 1  ;;  %v792_v16 = vrot.slane %v743_v4, 1  ;;  %v883_v17 = vmul.f32 %v2363_v58, %v729_v36 }
  0x29   : > { %1950 = vmatprep.subr.bf16.mxu0 %v2067_v46  ;;  %1977 = vmatprep.subr.bf16.mxu1 %v2067_v46  ;;  %v706_v7 = vadd.f32 %v690_v56, %v634_v61  ;;  %v929_v19 = vrot.slane %v881_v9, 2  ;;  %v930_v21 = vrot.slane %v882_v10, 2  ;;  %v2387_v22 = vrot.slane %v2308_v8, %v1039_v63  ;;  %v512_v61 = vld [vmem:[%s2300_s22 + $0x30] sm:$0xe]  ;;  %v1785_v9 = vld [vmem:[%s2300_s22 + $0x3c] sm:$0xff]  }
  0x2a   : > { %v1091_v23 = vsub.s32 7, %v2290_v3  ;;  %v791_v25 = vsel %vm435_vm0, %v789_v12, %v790_v14  ;;  %v793_v26 = vsel %vm435_vm0, %v790_v14, %v792_v16  ;;  %v932_v27 = vrot.slane %v883_v17, 2  ;;  %v2436_v10 = vld [vmem:[%s2968_s2] ss:$0 sm:$0xff] }
  0x2b   : > { %v1221_v28 = vunpack.c.l.bf16 %v1835_v11  ;;  %v845_v30 = vadd.f32 %v791_v25, %v705_v6  ;;  %v846_v31 = vadd.f32 %v793_v26, %v706_v7  ;;  %v931_v32 = vsel %vm576_vm1, %v929_v19, %v930_v21 }
  0x2c   : > { %1951 = vmatpush3.bf16.msra.mxu0 %v2067_v46  ;;  %1985 = vmatpush3.bf16.msra.mxu1 %v2067_v46  ;;  %v1041_v3 = vmul.f32 %v2365_v59, %v2387_v22  ;;  %v933_v33 = vsel %vm576_vm1, %v930_v21, %v932_v27  ;;  %v1042_v34 = vmul.f32 %v2367_v62, %v2387_v22  ;;  %v2408_v41 = vunpack.c.l.bf16 %v1914_v29 }
  0x2d   : > { %1952 = vmatprep.subr.bf16.mxu0 %v2068_v0  ;;  %1978 = vmatprep.subr.bf16.mxu1 %v2068_v0  ;;  %v2403_v35 = vrot.slane %v2308_v8, %v1091_v23  ;;  %v1233_v36 = vmul.f32 %v2384_v18, %v1221_v28  ;;  %v985_v37 = vadd.f32 %v931_v32, %v845_v30  ;;  %v2417_v53 = vunpack.c.h.bf16 %v1914_v29 }
  0x2e   : > { %v986_v38 = vadd.f32 %v933_v33, %v846_v31  ;;  %v1234_v39 = vmul.f32 %v2367_v62, %v2384_v18  ;;  %v1235_v48 = vmul.f32 %v2384_v18, %v1081_v5  ;;  %v343_v56 = vmul.f32 %v2408_v41, %v2313_v13 }
  0x2f   : > { %v1093_v42 = vmul.f32 %v2365_v59, %v2403_v35  ;;  %v1094_v8 = vmul.f32 %v2367_v62, %v2403_v35  ;;  %v1095_v43 = vmul.f32 %v2403_v35, %v1081_v5  ;;  %v1281_v44 = vrot.slane %v1233_v36, 2 }
  0x30   : > { %1953 = vmatpush3.bf16.msra.mxu0 %v2068_v0  ;;  %1986 = vmatpush3.bf16.msra.mxu1 %v2068_v0  ;;  %v1057_v46 = vadd.f32 %v1041_v3, %v985_v37  ;;  %v1058_v47 = vadd.f32 %v1042_v34, %v986_v38  ;;  %v1282_v49 = vrot.slane %v1234_v39, 2  ;;  %v1284_v55 = vrot.slane %v1235_v48, 2  ;;  %v1797_v3 = vld [vmem:[%s2300_s22 + $0x44] sm:$0x1] }
  0x31   : > { %1954 = vmatprep.subr.bf16.mxu0 %v2069_v24  ;;  %1979 = vmatprep.subr.bf16.mxu1 %v2069_v24  ;;  %v1141_v50 = vrot.slane %v1093_v42, 1  ;;  %v1142_v51 = vrot.slane %v1094_v8, 1  ;;  %v1144_v52 = vrot.slane %v1095_v43, 1  ;;  %v379_v60 = vunpack.c.l.bf16 %v371_v45  ;;  %v1805_v43 = vld [vmem:[%s2300_s22 + $0x3c] sm:$0xe] }
  0x32   : > { %v1283_v54 = vsel %vm576_vm1, %v1281_v44, %v1282_v49  ;;  %v344_v1 = vmul.f32 %v2417_v53, %v2313_v13  ;;  %v399_v2 = vmul.f32 %v2408_v41, %v2317_v15  ;;  %v1285_v6 = vsel %vm576_vm1, %v1282_v49, %v1284_v55 }
  0x33   : > { %v1143_v63 = vsel %vm435_vm0, %v1141_v50, %v1142_v51  ;;  %v1145_v0 = vsel %vm435_vm0, %v1142_v51, %v1144_v52  ;;  %v400_v7 = vmul.f32 %v2417_v53, %v2317_v15  ;;  %v401_v11 = vmul.f32 %v2317_v15, %v379_v60 }
  0x34   : > { %1955 = vmatpush3.bf16.msra.mxu0 %v2069_v24  ;;  %1987 = vmatpush3.bf16.msra.mxu1 %v2069_v24  ;;  %v1197_v4 = vadd.f32 %v1143_v63, %v1057_v46  ;;  %v1198_v5 = vadd.f32 %v1145_v0, %v1058_v47  ;;  %v456_v12 = vrot.slane %v399_v2, 1  ;;  %v520_v14 = vunpack.c.l.bf16 %v512_v61  ;;  %v2445_v24 = vld [vmem:[%s2969_s3] ss:$0 sm:$0xff]  ;;  %v1831_v2 = vld [vmem:[%s2300_s22 + $0x50] sm:$0x1] }
  0x35   : > { %v541_v16 = vmul.f32 %v2417_v53, %v2322_v20  ;;  %v457_v21 = vrot.slane %v400_v7, 1  ;;  %v542_v23 = vmul.f32 %v2322_v20, %v379_v60  ;;  %v459_v25 = vrot.slane %v401_v11, 1  ;;  %v1922_v60 = vld [vmem:[%s2300_s22 + $0x48] sm:$0xff]  }
  0x36   : > { %v1337_v17 = vadd.f32 %v1283_v54, %v1197_v4  ;;  %v1338_v19 = vadd.f32 %v1285_v6, %v1198_v5  ;;  %v540_v26 = vmul.f32 %v2322_v20, %v520_v14  ;;  %v677_v28 = vunpack.c.l.bf16 %v1785_v9 }
  0x37   : > { %v598_v27 = vrot.slane %v541_v16, 2  ;;  %v458_v31 = vsel %vm435_vm0, %v456_v12, %v457_v21  ;;  %v600_v32 = vrot.slane %v542_v23, 2  ;;  %v460_v33 = vsel %vm435_vm0, %v457_v21, %v459_v25  ;;  %v1839_v23 = vld [vmem:[%s2300_s22 + $0x48] sm:$0xe] }
  0x38   : > { %v1360_v29 = vmul.f32 %v2436_v10, %v1337_v17  ;;  %v1361_v30 = vmul.f32 %v2436_v10, %v1338_v19  ;;  %v500_v34 = vadd.f32 %v458_v31, %v343_v56  ;;  %v597_v36 = vrot.slane %v540_v26, 2 }
  0x39   : > { %v678_v37 = vunpack.c.h.bf16 %v1785_v9  ;;  %v501_v42 = vadd.f32 %v460_v33, %v344_v1  ;;  %v601_v8 = vsel %vm576_vm1, %v598_v27, %v600_v32  ;;  %v697_v45 = vmul.f32 %v2342_v40, %v677_v28 }
  0x3a   : > { %v1383_v38 = vadd.f32 %v2445_v24, %v1360_v29  ;;  %v1384_v39 = vadd.f32 %v2445_v24, %v1361_v30  ;;  %v599_v44 = vsel %vm576_vm1, %v597_v36, %v598_v27  ;;  %v733_v47 = vunpack.c.l.bf16 %v1797_v3 }
  0x3b   : > { %v698_v46 = vmul.f32 %v2342_v40, %v678_v37  ;;  %v641_v50 = vadd.f32 %v599_v44, %v500_v34  ;;  %v642_v51 = vadd.f32 %v601_v8, %v501_v42  ;;  %v753_v52 = vmul.f32 %v2360_v57, %v677_v28 }
  0x3c   : > { %v1399_v48 = vmax.f32 %v1383_v38, 0.0  ;;  %v1400_v49 = vmax.f32 %v1384_v39, 0.0  ;;  %v754_v54 = vmul.f32 %v2360_v57, %v678_v37  ;;  %v755_v55 = vmul.f32 %v2360_v57, %v733_v47 }
  0x3d   : > { %v873_v56 = vunpack.c.l.bf16 %v1805_v43  ;;  %v713_v63 = vadd.f32 %v697_v45, %v641_v50  ;;  %v714_v0 = vadd.f32 %v698_v46, %v642_v51  ;;  %v894_v1 = vmul.f32 %v2363_v58, %v678_v37  ;;  %v301_v37 = vld [vmem:[%s2300_s22 + $0xc] sm:$0xff]  }
  0x3e   : > { %v1415_v61 = vpack.c.bf16 %v1400_v49, %v1399_v48  ;;  %v809_v4 = vrot.slane %v753_v52, 1  ;;  %v810_v5 = vrot.slane %v754_v54, 1  ;;  %v812_v6 = vrot.slane %v755_v55, 1  ;;  %v509_v52 = vld [vmem:[%s2300_s22 + $0xc] sm:$0xe] }
  0x3f   : > { %v893_v7 = vmul.f32 %v2363_v58, %v873_v56  ;;  %v895_v9 = vmul.f32 %v2363_v58, %v733_v47  ;;  %v950_v11 = vrot.slane %v894_v1, 2  ;;  %v2468_v12 = vunpack.c.l.bf16 %v1922_v60  ;;  %v368_v47 = vld [vmem:[%s2300_s22 + $0x14] sm:$0x1] }
  0x40   : > { %1956 = vmatprep.mubr.bf16.mxu0 %v1415_v61  ;;  %v2470_v14 = vunpack.c.h.bf16 %v1922_v60  ;;  %v811_v16 = vsel %vm435_vm0, %v809_v4, %v810_v5  ;;  %v813_v17 = vsel %vm435_vm0, %v810_v5, %v812_v6  ;;  %v1085_v21 = vunpack.c.l.bf16 %v1831_v2 }
  0x41   : > { %v949_v19 = vrot.slane %v893_v7, 2  ;;  %v853_v25 = vadd.f32 %v811_v16, %v713_v63  ;;  %v854_v26 = vadd.f32 %v813_v17, %v714_v0  ;;  %v952_v27 = vrot.slane %v895_v9, 2 }
  0x42   : > { %v1049_v28 = vmul.f32 %v2468_v12, %v2387_v22  ;;  %v1050_v30 = vmul.f32 %v2470_v14, %v2387_v22  ;;  %v1105_v31 = vmul.f32 %v2468_v12, %v2403_v35  ;;  %v1106_v32 = vmul.f32 %v2470_v14, %v2403_v35 }
  0x43   : > { %v951_v29 = vsel %vm576_vm1, %v949_v19, %v950_v11  ;;  %v953_v3 = vsel %vm576_vm1, %v950_v11, %v952_v27  ;;  %v1107_v34 = vmul.f32 %v2403_v35, %v1085_v21  ;;  %v1225_v36 = vunpack.c.l.bf16 %v1839_v23 }
  0x44   : > { %v993_v33 = vadd.f32 %v951_v29, %v853_v25  ;;  %v994_v38 = vadd.f32 %v953_v3, %v854_v26  ;;  %v1161_v39 = vrot.slane %v1105_v31, 1  ;;  %v1162_v42 = vrot.slane %v1106_v32, 1 }
  0x45   : > { %v1246_v8 = vmul.f32 %v2470_v14, %v2384_v18  ;;  %v1164_v44 = vrot.slane %v1107_v34, 1  ;;  %v1245_v45 = vmul.f32 %v2384_v18, %v1225_v36  ;;  %v1247_v46 = vmul.f32 %v2384_v18, %v1085_v21 }
  0x46   : > { %v1065_v43 = vadd.f32 %v1049_v28, %v993_v33  ;;  %v1066_v48 = vadd.f32 %v1050_v30, %v994_v38  ;;  %v1163_v49 = vsel %vm435_vm0, %v1161_v39, %v1162_v42  ;;  %v317_v51 = vunpack.c.l.bf16 %v301_v37 }
  0x47   : > { %v1302_v50 = vrot.slane %v1246_v8, 2  ;;  %v1165_v54 = vsel %vm435_vm0, %v1162_v42, %v1164_v44  ;;  %v1301_v56 = vrot.slane %v1245_v45, 2  ;;  %v1304_v60 = vrot.slane %v1247_v46, 2 }
  0x48   : > { %v1205_v55 = vadd.f32 %v1163_v49, %v1065_v43  ;;  %v1206_v61 = vadd.f32 %v1165_v54, %v1066_v48  ;;  %v318_v63 = vunpack.c.h.bf16 %v301_v37  ;;  %v337_v0 = vmul.f32 %v2313_v13, %v317_v51  ;;  %v1794_v37 = vld [vmem:[%s2300_s22 + $0x20] sm:$0x1]  ;;  %v1802_v43 = vld [vmem:[%s2300_s22 + $0x18] sm:$0xe] }
  0x49   : > { %v376_v1 = vunpack.c.l.bf16 %v368_v47  ;;  %v1303_v2 = vsel %vm576_vm1, %v1301_v56, %v1302_v50  ;;  %v1305_v4 = vsel %vm576_vm1, %v1302_v50, %v1304_v60  ;;  %v390_v5 = vmul.f32 %v2317_v15, %v317_v51  ;;  %v1813_v60 = vld [vmem:[%s2300_s22 + $0x24] sm:$0xff]  }
  0x4a   : > { %v517_v6 = vunpack.c.l.bf16 %v509_v52  ;;  %v1345_v7 = vadd.f32 %v1303_v2, %v1205_v55  ;;  %v1346_v9 = vadd.f32 %v1305_v4, %v1206_v61  ;;  %v338_v11 = vmul.f32 %v2313_v13, %v318_v63  ;;  %v1828_v2 = vld [vmem:[%s2300_s22 + $0x2c] sm:$0x1] }
  0x4b   : > { %v391_v16 = vmul.f32 %v2317_v15, %v318_v63  ;;  %v392_v17 = vmul.f32 %v2317_v15, %v376_v1  ;;  %v441_v19 = vrot.slane %v390_v5, 1  ;;  %v532_v23 = vmul.f32 %v2322_v20, %v318_v63 }
  0x4c   : > { %v531_v21 = vmul.f32 %v2322_v20, %v517_v6  ;;  %v1368_v25 = vmul.f32 %v2436_v10, %v1345_v7  ;;  %v1369_v26 = vmul.f32 %v2436_v10, %v1346_v9  ;;  %v533_v28 = vmul.f32 %v2322_v20, %v376_v1 }
  0x4d   : > { %v442_v27 = vrot.slane %v391_v16, 1  ;;  %v444_v29 = vrot.slane %v392_v17, 1  ;;  %v583_v31 = vrot.slane %v532_v23, 2  ;;  %v691_v32 = vmul.f32 %v2365_v59, %v2342_v40 }
  0x4e   : > { %v582_v30 = vrot.slane %v531_v21, 2  ;;  %v1391_v3 = vadd.f32 %v2445_v24, %v1368_v25  ;;  %v1392_v33 = vadd.f32 %v2445_v24, %v1369_v26  ;;  %v585_v36 = vrot.slane %v533_v28, 2  ;;  %v1836_v26 = vld [vmem:[%s2300_s22 + $0x24] sm:$0xe] }
  0x4f   : > { %v443_v34 = vsel %vm435_vm0, %v441_v19, %v442_v27  ;;  %v445_v38 = vsel %vm435_vm0, %v442_v27, %v444_v29  ;;  %v692_v8 = vmul.f32 %v2367_v62, %v2342_v40  ;;  %v730_v49 = vunpack.c.l.bf16 %v1794_v37 }
  0x50   : > { %v494_v39 = vadd.f32 %v443_v34, %v337_v0  ;;  %v584_v42 = vsel %vm576_vm1, %v582_v30, %v583_v31  ;;  %v1407_v44 = vmax.f32 %v1391_v3, 0.0  ;;  %v1408_v45 = vmax.f32 %v1392_v33, 0.0  ;;  %v309_v34 = vld [vmem:[%s2300_s22 + $0x3c] sm:$0xff]  }
  0x51   : > { %v495_v46 = vadd.f32 %v445_v38, %v338_v11  ;;  %v586_v47 = vsel %vm576_vm1, %v583_v31, %v585_v36  ;;  %v744_v50 = vmul.f32 %v2365_v59, %v2360_v57  ;;  %v745_v51 = vmul.f32 %v2367_v62, %v2360_v57 }
  0x52   : > { %v635_v48 = vadd.f32 %v584_v42, %v494_v39  ;;  %v1419_v52 = vpack.c.bf16 %v1408_v45, %v1407_v44  ;;  %v870_v55 = vunpack.c.l.bf16 %v1802_v43  ;;  %v885_v56 = vmul.f32 %v2367_v62, %v2363_v58 }
  0x53   : > { %v636_v54 = vadd.f32 %v586_v47, %v495_v46  ;;  %v746_v63 = vmul.f32 %v2360_v57, %v730_v49  ;;  %v794_v0 = vrot.slane %v744_v50, 1  ;;  %v795_v1 = vrot.slane %v745_v51, 1 }
  0x54   : > { %v707_v61 = vadd.f32 %v691_v32, %v635_v48  ;;  %1964 = vmatprep.mubr.bf16.mxu1 %v1419_v52  ;;  %v884_v5 = vmul.f32 %v2363_v58, %v870_v55  ;;  %v886_v6 = vmul.f32 %v2363_v58, %v730_v49  ;;  %v935_v7 = vrot.slane %v885_v56, 2  ;;  %v372_v49 = vld [vmem:[%s2300_s22 + $0x44] sm:$0x1] }
  0x55   : > { %v708_v4 = vadd.f32 %v692_v8, %v636_v54  ;;  %v796_v9 = vsel %vm435_vm0, %v794_v0, %v795_v1  ;;  %v797_v11 = vrot.slane %v746_v63, 1  ;;  %v1023_v16 = vunpack.c.l.bf16 %v1813_v60  ;;  %v513_v63 = vld [vmem:[%s2300_s22 + $0x3c] sm:$0xe] }
  0x56   : > { %v1024_v17 = vunpack.c.h.bf16 %v1813_v60  ;;  %v847_v19 = vadd.f32 %v796_v9, %v707_v61  ;;  %v934_v21 = vrot.slane %v884_v5, 2  ;;  %v937_v23 = vrot.slane %v886_v6, 2 }
  0x57   : > { %v1082_v25 = vunpack.c.l.bf16 %v1828_v2  ;;  %v798_v27 = vsel %vm435_vm0, %v795_v1, %v797_v11  ;;  %v1043_v28 = vmul.f32 %v2387_v22, %v1023_v16  ;;  %v1096_v30 = vmul.f32 %v2403_v35, %v1023_v16 }
  0x58   : > { %v1044_v29 = vmul.f32 %v2387_v22, %v1024_v17  ;;  %v848_v31 = vadd.f32 %v798_v27, %v708_v4  ;;  %v936_v32 = vsel %vm576_vm1, %v934_v21, %v935_v7  ;;  %v938_v3 = vsel %vm576_vm1, %v935_v7, %v937_v23 }
  0x59   : > { %v1097_v33 = vmul.f32 %v2403_v35, %v1024_v17  ;;  %v987_v36 = vadd.f32 %v936_v32, %v847_v19  ;;  %v1098_v37 = vmul.f32 %v2403_v35, %v1082_v25  ;;  %v1146_v38 = vrot.slane %v1096_v30, 1 }
  0x5a   : > { %v1222_v39 = vunpack.c.l.bf16 %v1836_v26  ;;  %v988_v42 = vadd.f32 %v938_v3, %v848_v31  ;;  %v1237_v43 = vmul.f32 %v2384_v18, %v1024_v17  ;;  %v1238_v44 = vmul.f32 %v2384_v18, %v1082_v25 }
  0x5b   : > { %v1147_v8 = vrot.slane %v1097_v33, 1  ;;  %v1059_v45 = vadd.f32 %v1043_v28, %v987_v36  ;;  %v1149_v46 = vrot.slane %v1098_v37, 1  ;;  %v325_v48 = vunpack.c.l.bf16 %v309_v34 }
  0x5c   : > { %v1236_v47 = vmul.f32 %v2384_v18, %v1222_v39  ;;  %v1060_v50 = vadd.f32 %v1044_v29, %v988_v42  ;;  %v1287_v52 = vrot.slane %v1237_v43, 2  ;;  %v1289_v54 = vrot.slane %v1238_v44, 2  ;;  %v1806_v42 = vld [vmem:[%s2300_s22 + $0x48] sm:$0xe] }
  0x5d   : > { %v1148_v51 = vsel %vm435_vm0, %v1146_v38, %v1147_v8  ;;  %v1150_v55 = vsel %vm435_vm0, %v1147_v8, %v1149_v46  ;;  %v326_v61 = vunpack.c.h.bf16 %v309_v34  ;;  %v345_v2 = vmul.f32 %v2313_v13, %v325_v48  ;;  %v1798_v34 = vld [vmem:[%s2300_s22 + $0x50] sm:$0x1] }
  0x5e   : > { %v1199_v56 = vadd.f32 %v1148_v51, %v1059_v45  ;;  %v1286_v60 = vrot.slane %v1236_v47, 2  ;;  %v1200_v0 = vadd.f32 %v1150_v55, %v1060_v50  ;;  %v1290_v1 = vsel %vm576_vm1, %v1287_v52, %v1289_v54  ;;  %v1821_v55 = vld [vmem:[%s2300_s22 + $0x54] sm:$0xff]  }
  0x5f   : > { %v380_v4 = vunpack.c.l.bf16 %v372_v49  ;;  %v346_v6 = vmul.f32 %v2313_v13, %v326_v61  ;;  %v402_v7 = vmul.f32 %v2317_v15, %v325_v48  ;;  %v403_v9 = vmul.f32 %v2317_v15, %v326_v61 }
  0x60   : > { %v1288_v5 = vsel %vm576_vm1, %v1286_v60, %v1287_v52  ;;  %v1340_v16 = vadd.f32 %v1290_v1, %v1200_v0  ;;  %v521_v19 = vunpack.c.l.bf16 %v513_v63  ;;  %v544_v25 = vmul.f32 %v2322_v20, %v326_v61 }
  0x61   : > { %v1339_v11 = vadd.f32 %v1288_v5, %v1199_v56  ;;  %v404_v17 = vmul.f32 %v2317_v15, %v380_v4  ;;  %v461_v21 = vrot.slane %v402_v7, 1  ;;  %v462_v23 = vrot.slane %v403_v9, 1 }
  0x62   : > { %v545_v26 = vmul.f32 %v2322_v20, %v380_v4  ;;  %v1363_v28 = vmul.f32 %v2436_v10, %v1340_v16  ;;  %v543_v30 = vmul.f32 %v2322_v20, %v521_v19  ;;  %v603_v32 = vrot.slane %v544_v25, 2 }
  0x63   : > { %v1362_v27 = vmul.f32 %v2436_v10, %v1339_v11  ;;  %v464_v29 = vrot.slane %v404_v17, 1  ;;  %v463_v31 = vsel %vm435_vm0, %v461_v21, %v462_v23  ;;  %v699_v33 = vmul.f32 %v2468_v12, %v2342_v40  ;;  %v1832_v11 = vld [vmem:[%s2300_s22 + $0x5c] sm:$0x1] }
  0x64   : > { %v605_v3 = vrot.slane %v545_v26, 2  ;;  %v1386_v37 = vadd.f32 %v2445_v24, %v1363_v28  ;;  %v502_v39 = vadd.f32 %v463_v31, %v345_v2  ;;  %v602_v43 = vrot.slane %v543_v30, 2  ;;  %v1840_v28 = vld [vmem:[%s2300_s22 + $0x54] sm:$0xe] }
  0x65   : > { %v1385_v36 = vadd.f32 %v2445_v24, %v1362_v27  ;;  %v465_v38 = vsel %vm435_vm0, %v462_v23, %v464_v29  ;;  %v700_v45 = vmul.f32 %v2470_v14, %v2342_v40  ;;  %v734_v48 = vunpack.c.l.bf16 %v1798_v34 }
  0x66   : > { %v503_v8 = vadd.f32 %v465_v38, %v346_v6  ;;  %v606_v44 = vsel %vm576_vm1, %v603_v32, %v605_v3  ;;  %v1402_v47 = vmax.f32 %v1386_v37, 0.0  ;;  %v756_v49 = vmul.f32 %v2468_v12, %v2360_v57 }
  0x67   : > { %v1401_v46 = vmax.f32 %v1385_v36, 0.0  ;;  %v604_v50 = vsel %vm576_vm1, %v602_v43, %v603_v32  ;;  %v757_v52 = vmul.f32 %v2470_v14, %v2360_v57  ;;  %v874_v54 = vunpack.c.l.bf16 %v1806_v42 }
  0x68   : > { %v644_v51 = vadd.f32 %v606_v44, %v503_v8  ;;  %v643_v60 = vadd.f32 %v604_v50, %v502_v39  ;;  %v758_v61 = vmul.f32 %v2360_v57, %v734_v48  ;;  %v814_v63 = vrot.slane %v756_v49, 1 }
  0x69   : > { %v1416_v56 = vpack.c.bf16 %v1402_v47, %v1401_v46  ;;  %v815_v1 = vrot.slane %v757_v52, 1  ;;  %v896_v2 = vmul.f32 %v2363_v58, %v874_v54  ;;  %v897_v4 = vmul.f32 %v2470_v14, %v2363_v58  ;;  %v369_v46 = vld [vmem:[%s2300_s22 + $0x20] sm:$0x1] }
  0x6a   : > { %v716_v0 = vadd.f32 %v700_v45, %v644_v51  ;;  %v715_v5 = vadd.f32 %v699_v33, %v643_v60  ;;  %v817_v6 = vrot.slane %v758_v61, 1  ;;  %v898_v7 = vmul.f32 %v2363_v58, %v734_v48 }
  0x6b   : > { %1957 = vmatmul.mubr.bf16.vlgmr.msra.gmra.mxu0 %v1416_v56  ;;  %v1031_v9 = vunpack.c.l.bf16 %v1821_v55  ;;  %v816_v16 = vsel %vm435_vm0, %v814_v63, %v815_v1  ;;  %v954_v17 = vrot.slane %v896_v2, 2  ;;  %v955_v19 = vrot.slane %v897_v4, 2  ;;  %v510_v56 = vld [vmem:[%s2300_s22 + $0x18] sm:$0xe] }
  0x6c   : > { %v1032_v21 = vunpack.c.h.bf16 %v1821_v55  ;;  %v818_v23 = vsel %vm435_vm0, %v815_v1, %v817_v6  ;;  %v855_v25 = vadd.f32 %v816_v16, %v715_v5  ;;  %v957_v26 = vrot.slane %v898_v7, 2  ;;  %v1781_v16 = vld [vmem:[%s2300_s22 + $0x24] sm:$0xff]  }
  0x6d   : > { %v1051_v27 = vmul.f32 %v2387_v22, %v1031_v9  ;;  %v856_v29 = vadd.f32 %v818_v23, %v716_v0  ;;  %v956_v30 = vsel %vm576_vm1, %v954_v17, %v955_v19  ;;  %v1086_v32 = vunpack.c.l.bf16 %v1832_v11 }
  0x6e   : > { %v1052_v31 = vmul.f32 %v2387_v22, %v1032_v21  ;;  %v958_v3 = vsel %vm576_vm1, %v955_v19, %v957_v26  ;;  %v995_v33 = vadd.f32 %v956_v30, %v855_v25  ;;  %v1108_v34 = vmul.f32 %v2403_v35, %v1031_v9 }
  0x6f   : > { %v1109_v36 = vmul.f32 %v2403_v35, %v1032_v21  ;;  %v996_v37 = vadd.f32 %v958_v3, %v856_v29  ;;  %v1110_v38 = vmul.f32 %v2403_v35, %v1086_v32  ;;  %v1226_v39 = vunpack.c.l.bf16 %v1840_v28 }
  0x70   : > { %v1249_v42 = vmul.f32 %v2384_v18, %v1032_v21  ;;  %v1067_v8 = vadd.f32 %v1051_v27, %v995_v33  ;;  %v1166_v43 = vrot.slane %v1108_v34, 1  ;;  %v1250_v45 = vmul.f32 %v2384_v18, %v1086_v32 }
  0x71   : > { %v1167_v44 = vrot.slane %v1109_v36, 1  ;;  %v1068_v47 = vadd.f32 %v1052_v31, %v996_v37  ;;  %v1169_v48 = vrot.slane %v1110_v38, 1  ;;  %v1248_v49 = vmul.f32 %v2384_v18, %v1226_v39 }
  0x72   : > { %v1307_v50 = vrot.slane %v1249_v42, 2  ;;  %v1309_v52 = vrot.slane %v1250_v45, 2  ;;  %v339_v54 = vmul.f32 %v2365_v59, %v2313_v13  ;;  %v340_v55 = vmul.f32 %v2367_v62, %v2313_v13  ;;  %v1803_v45 = vld [vmem:[%s2300_s22 + $0x24] sm:$0xe] }
  0x73   : > { %v1168_v51 = vsel %vm435_vm0, %v1166_v43, %v1167_v44  ;;  %v1170_v60 = vsel %vm435_vm0, %v1167_v44, %v1169_v48  ;;  %v1306_v63 = vrot.slane %v1248_v49, 2  ;;  %v377_v0 = vunpack.c.l.bf16 %v369_v46 }
  0x74   : > { %v1207_v61 = vadd.f32 %v1168_v51, %v1067_v8  ;;  %v1208_v1 = vadd.f32 %v1170_v60, %v1068_v47  ;;  %v1310_v2 = vsel %vm576_vm1, %v1307_v50, %v1309_v52  ;;  %v393_v4 = vmul.f32 %v2365_v59, %v2317_v15 }
  0x75   : > { %v394_v5 = vmul.f32 %v2367_v62, %v2317_v15  ;;  %v1308_v6 = vsel %vm576_vm1, %v1306_v63, %v1307_v50  ;;  %v395_v7 = vmul.f32 %v2317_v15, %v377_v0  ;;  %v518_v9 = vunpack.c.l.bf16 %v510_v56  ;;  %v1829_v63 = vld [vmem:[%s2300_s22 + $0x38] sm:$0x1] }
  0x76   : > { %v535_v11 = vmul.f32 %v2367_v62, %v2322_v20  ;;  %v1347_v17 = vadd.f32 %v1308_v6, %v1207_v61  ;;  %v1348_v19 = vadd.f32 %v1310_v2, %v1208_v1  ;;  %v446_v21 = vrot.slane %v393_v4, 1  ;;  %v1795_v62 = vld [vmem:[%s2300_s22 + $0x2c] sm:$0x1] }
  0x77   : > { %v447_v23 = vrot.slane %v394_v5, 1  ;;  %v449_v25 = vrot.slane %v395_v7, 1  ;;  %v534_v59 = vmul.f32 %v2322_v20, %v518_v9  ;;  %v536_v26 = vmul.f32 %v2322_v20, %v377_v0 }
  0x78   : > { %v588_v27 = vrot.slane %v535_v11, 2  ;;  %v1370_v28 = vmul.f32 %v2436_v10, %v1347_v17  ;;  %v1371_v29 = vmul.f32 %v2436_v10, %v1348_v19  ;;  %v673_v31 = vunpack.c.l.bf16 %v1781_v16  ;;  %v1837_v11 = vld [vmem:[%s2300_s22 + $0x30] sm:$0xe] }
  0x79   : > { %v448_v30 = vsel %vm435_vm0, %v446_v21, %v447_v23  ;;  %v450_v32 = vsel %vm435_vm0, %v447_v23, %v449_v25  ;;  %v587_v33 = vrot.slane %v534_v59, 2  ;;  %v590_v34 = vrot.slane %v536_v26, 2 }
  0x7a   : > { %v496_v3 = vadd.f32 %v448_v30, %v339_v54  ;;  %v1393_v36 = vadd.f32 %v2445_v24, %v1370_v28  ;;  %v1394_v37 = vadd.f32 %v2445_v24, %v1371_v29  ;;  %v497_v38 = vadd.f32 %v450_v32, %v340_v55 }
  0x7b   : > { %v674_v39 = vunpack.c.h.bf16 %v1781_v16  ;;  %v589_v42 = vsel %vm576_vm1, %v587_v33, %v588_v27  ;;  %v591_v8 = vsel %vm576_vm1, %v588_v27, %v590_v34  ;;  %v693_v43 = vmul.f32 %v2342_v40, %v673_v31 }
  0x7c   : > { %v731_v44 = vunpack.c.l.bf16 %v1795_v62  ;;  %v1409_v46 = vmax.f32 %v1393_v36, 0.0  ;;  %v1410_v47 = vmax.f32 %v1394_v37, 0.0  ;;  %v637_v48 = vadd.f32 %v589_v42, %v496_v3 }
  0x7d   : > { %v638_v49 = vadd.f32 %v591_v8, %v497_v38  ;;  %v694_v50 = vmul.f32 %v2342_v40, %v674_v39  ;;  %v747_v51 = vmul.f32 %v2360_v57, %v673_v31  ;;  %v748_v52 = vmul.f32 %v2360_v57, %v674_v39  ;;  %v373_v8 = vld [vmem:[%s2300_s22 + $0x50] sm:$0x1] }
  0x7e   : > { %v749_v54 = vmul.f32 %v2360_v57, %v731_v44  ;;  %v1420_v55 = vpack.c.bf16 %v1410_v47, %v1409_v46  ;;  %v709_v56 = vadd.f32 %v693_v43, %v637_v48  ;;  %v871_v60 = vunpack.c.l.bf16 %v1803_v45  ;;  %v514_v46 = vld [vmem:[%s2300_s22 + $0x48] sm:$0xe] }
  0x7f   : > { %v888_v61 = vmul.f32 %v2363_v58, %v674_v39  ;;  %v710_v0 = vadd.f32 %v694_v50, %v638_v49  ;;  %v799_v1 = vrot.slane %v747_v51, 1  ;;  %v800_v2 = vrot.slane %v748_v52, 1 }
  0x80   : > { %v802_v4 = vrot.slane %v749_v54, 1  ;;  %1965 = vmatmul.mubr.bf16.vlgmr.msra.gmra.mxu1 %v1420_v55  ;;  %v887_v5 = vmul.f32 %v2363_v58, %v871_v60  ;;  %v889_v6 = vmul.f32 %v2363_v58, %v731_v44  ;;  %v1045_v9 = vmul.f32 %v2408_v41, %v2387_v22 }
  0x81   : > { %v940_v7 = vrot.slane %v888_v61, 2  ;;  %v801_v16 = vsel %vm435_vm0, %v799_v1, %v800_v2  ;;  %v1046_v19 = vmul.f32 %v2417_v53, %v2387_v22  ;;  %v1083_v21 = vunpack.c.l.bf16 %v1829_v63  ;;  %v1789_v63 = vld [vmem:[%s2300_s22 + $0x54] sm:$0xff]  }
  0x82   : > { %v803_v17 = vsel %vm435_vm0, %v800_v2, %v802_v4  ;;  %v849_v23 = vadd.f32 %v801_v16, %v709_v56  ;;  %v939_v59 = vrot.slane %v887_v5, 2  ;;  %v942_v26 = vrot.slane %v889_v6, 2 }
  0x83   : > { %v850_v25 = vadd.f32 %v803_v17, %v710_v0  ;;  %v1099_v27 = vmul.f32 %v2408_v41, %v2403_v35  ;;  %v1100_v28 = vmul.f32 %v2417_v53, %v2403_v35  ;;  %v1101_v29 = vmul.f32 %v2403_v35, %v1083_v21 }
  0x84   : > { %v1223_v30 = vunpack.c.l.bf16 %v1837_v11  ;;  %v941_v31 = vsel %vm576_vm1, %v939_v59, %v940_v7  ;;  %v943_v62 = vsel %vm576_vm1, %v940_v7, %v942_v26  ;;  %v1240_v32 = vmul.f32 %v2417_v53, %v2384_v18 }
  0x85   : > { %v1241_v3 = vmul.f32 %v2384_v18, %v1083_v21  ;;  %v989_v33 = vadd.f32 %v941_v31, %v849_v23  ;;  %v990_v34 = vadd.f32 %v943_v62, %v850_v25  ;;  %v1151_v41 = vrot.slane %v1099_v27, 1 }
  0x86   : > { %v1152_v36 = vrot.slane %v1100_v28, 1  ;;  %v1154_v37 = vrot.slane %v1101_v29, 1  ;;  %v1239_v38 = vmul.f32 %v2384_v18, %v1223_v30  ;;  %v1292_v39 = vrot.slane %v1240_v32, 2  ;;  %v1799_v28 = vld [vmem:[%s2300_s22 + $0x5c] sm:$0x1] }
  0x87   : > { %v1294_v42 = vrot.slane %v1241_v3, 2  ;;  %v1061_v43 = vadd.f32 %v1045_v9, %v989_v33  ;;  %v1062_v44 = vadd.f32 %v1046_v19, %v990_v34  ;;  %v347_v53 = vmul.f32 %v2468_v12, %v2313_v13  ;;  %v1807_v32 = vld [vmem:[%s2300_s22 + $0x54] sm:$0xe] }
  0x88   : > { %v1153_v45 = vsel %vm435_vm0, %v1151_v41, %v1152_v36  ;;  %v1155_v47 = vsel %vm435_vm0, %v1152_v36, %v1154_v37  ;;  %v1291_v48 = vrot.slane %v1239_v38, 2  ;;  %v348_v18 = vmul.f32 %v2470_v14, %v2313_v13 }
  0x89   : > { %v1295_v49 = vsel %vm576_vm1, %v1292_v39, %v1294_v42  ;;  %v1201_v50 = vadd.f32 %v1153_v45, %v1061_v43  ;;  %v1202_v51 = vadd.f32 %v1155_v47, %v1062_v44  ;;  %v381_v52 = vunpack.c.l.bf16 %v373_v8  ;;  %v1923_v42 = vld [vmem:[%s2300_s22 + $0x60] sm:$0xff]  }
  0x8a   : > { %v405_v54 = vmul.f32 %v2468_v12, %v2317_v15  ;;  %v1293_v55 = vsel %vm576_vm1, %v1291_v48, %v1292_v39  ;;  %v406_v56 = vmul.f32 %v2470_v14, %v2317_v15  ;;  %v522_v60 = vunpack.c.l.bf16 %v514_v46 }
  0x8b   : > { %v547_v61 = vmul.f32 %v2470_v14, %v2322_v20  ;;  %v1341_v0 = vadd.f32 %v1293_v55, %v1201_v50  ;;  %v1342_v1 = vadd.f32 %v1295_v49, %v1202_v51  ;;  %v407_v2 = vmul.f32 %v2317_v15, %v381_v52 }
  0x8c   : > { %v466_v4 = vrot.slane %v405_v54, 1  ;;  %v467_v5 = vrot.slane %v406_v56, 1  ;;  %v546_v6 = vmul.f32 %v2322_v20, %v522_v60  ;;  %v548_v12 = vmul.f32 %v2322_v20, %v381_v52 }
  0x8d   : > { %v608_v7 = vrot.slane %v547_v61, 2  ;;  %v1364_v9 = vmul.f32 %v2436_v10, %v1341_v0  ;;  %v1365_v11 = vmul.f32 %v2436_v10, %v1342_v1  ;;  %v469_v16 = vrot.slane %v407_v2, 1  ;;  %v1841_v2 = vld [vmem:[%s2300_s22 + $0x60] sm:$0xe] }
  0x8e   : > { %v681_v14 = vunpack.c.l.bf16 %v1789_v63  ;;  %v468_v17 = vsel %vm435_vm0, %v466_v4, %v467_v5  ;;  %v607_v19 = vrot.slane %v546_v6, 2  ;;  %v610_v21 = vrot.slane %v548_v12, 2 }
  0x8f   : > { %v682_v23 = vunpack.c.h.bf16 %v1789_v63  ;;  %v1387_v25 = vadd.f32 %v2445_v24, %v1364_v9  ;;  %v1388_v59 = vadd.f32 %v2445_v24, %v1365_v11  ;;  %v470_v26 = vsel %vm435_vm0, %v467_v5, %v469_v16 }
  0x90   : > { %v504_v27 = vadd.f32 %v468_v17, %v347_v53  ;;  %v505_v29 = vadd.f32 %v470_v26, %v348_v18  ;;  %v609_v30 = vsel %vm576_vm1, %v607_v19, %v608_v7  ;;  %v611_v31 = vsel %vm576_vm1, %v608_v7, %v610_v21  ;;  %v1833_v53 = vld [vmem:[%s2300_s22 + $0x68] sm:$0x1] }
  0x91   : > { %v701_v62 = vmul.f32 %v2342_v40, %v681_v14  ;;  %v1403_v3 = vmax.f32 %v1387_v25, 0.0  ;;  %v1404_v33 = vmax.f32 %v1388_v59, 0.0  ;;  %v702_v41 = vmul.f32 %v2342_v40, %v682_v23  ;;  %v2715_v26 = vld [vmem:[%s2967_s1 + $0x8] ss:$0 sm:$0xff] }
  0x92   : > { %v645_v34 = vadd.f32 %v609_v30, %v504_v27  ;;  %v646_v36 = vadd.f32 %v611_v31, %v505_v29  ;;  %v735_v37 = vunpack.c.l.bf16 %v1799_v28  ;;  %v759_v38 = vmul.f32 %v2360_v57, %v681_v14  ;;  %v305_v14 = vld [vmem:[%s2300_s22 + $0x24] sm:$0xff]  }
  0x93   : > { %v760_v39 = vmul.f32 %v2360_v57, %v682_v23  ;;  %v1417_v8 = vpack.c.bf16 %v1404_v33, %v1403_v3  ;;  %v875_v44 = vunpack.c.l.bf16 %v1807_v32  ;;  %v900_v45 = vmul.f32 %v2363_v58, %v682_v23  ;;  %v370_v32 = vld [vmem:[%s2300_s22 + $0x2c] sm:$0x1] }
  0x94   : > { %v717_v43 = vadd.f32 %v701_v62, %v645_v34  ;;  %v718_v46 = vadd.f32 %v702_v41, %v646_v36  ;;  %v761_v47 = vmul.f32 %v2360_v57, %v735_v37  ;;  %v819_v48 = vrot.slane %v759_v38, 1  ;;  %v511_v36 = vld [vmem:[%s2300_s22 + $0x24] sm:$0xe] }
  0x95   : > { %v820_v49 = vrot.slane %v760_v39, 1  ;;  %1960 = vmatprep.mubr.bf16.mxu0 %v1417_v8  ;;  %v899_v18 = vmul.f32 %v2363_v58, %v875_v44  ;;  %v901_v50 = vmul.f32 %v2363_v58, %v735_v37  ;;  %v960_v51 = vrot.slane %v900_v45, 2 }
  0x96   : > { %v2693_v52 = vunpack.c.l.bf16 %v1923_v42  ;;  %v822_v55 = vrot.slane %v761_v47, 1  ;;  %v2696_v56 = vunpack.c.h.bf16 %v1923_v42  ;;  %v1087_v60 = vunpack.c.l.bf16 %v1833_v53 }
  0x97   : > { %v821_v54 = vsel %vm435_vm0, %v819_v48, %v820_v49  ;;  %v959_v63 = vrot.slane %v899_v18, 2  ;;  %v962_v0 = vrot.slane %v901_v50, 2  ;;  %v1227_v23 = vunpack.c.l.bf16 %v1841_v2 }
  0x98   : > { %v857_v61 = vadd.f32 %v821_v54, %v717_v43  ;;  %v1053_v1 = vmul.f32 %v2693_v52, %v2387_v22  ;;  %v823_v4 = vsel %vm435_vm0, %v820_v49, %v822_v55  ;;  %v1054_v5 = vmul.f32 %v2696_v56, %v2387_v22  ;;  %v1917_v49 = vld [vmem:[%s2300_s22 + $0x30] sm:$0xff]  }
  0x99   : > { %v1111_v6 = vmul.f32 %v2693_v52, %v2403_v35  ;;  %v1112_v12 = vmul.f32 %v2696_v56, %v2403_v35  ;;  %v858_v7 = vadd.f32 %v823_v4, %v718_v46  ;;  %v961_v9 = vsel %vm576_vm1, %v959_v63, %v960_v51 }
  0x9a   : > { %v963_v11 = vsel %vm576_vm1, %v960_v51, %v962_v0  ;;  %v1113_v16 = vmul.f32 %v2403_v35, %v1087_v60  ;;  %v997_v17 = vadd.f32 %v961_v9, %v857_v61  ;;  %v1252_v27 = vmul.f32 %v2715_v26, %v2696_v56 }
  0x9b   : > { %v1171_v19 = vrot.slane %v1111_v6, 1  ;;  %v1172_v21 = vrot.slane %v1112_v12, 1  ;;  %v998_v25 = vadd.f32 %v963_v11, %v858_v7  ;;  %v1253_v28 = vmul.f32 %v2715_v26, %v1087_v60 }
  0x9c   : > { %v1174_v59 = vrot.slane %v1113_v16, 1  ;;  %v1069_v29 = vadd.f32 %v1053_v1, %v997_v17  ;;  %v1251_v31 = vmul.f32 %v2715_v26, %v1227_v23  ;;  %v321_v62 = vunpack.c.l.bf16 %v305_v14  ;;  %v1796_v17 = vld [vmem:[%s2300_s22 + $0x38] sm:$0x1] }
  0x9d   : > { %v1173_v30 = vsel %vm435_vm0, %v1171_v19, %v1172_v21  ;;  %v1070_v3 = vadd.f32 %v1054_v5, %v998_v25  ;;  %v1312_v34 = vrot.slane %v1252_v27, 2  ;;  %v1314_v41 = vrot.slane %v1253_v28, 2  ;;  %v1804_v25 = vld [vmem:[%s2300_s22 + $0x30] sm:$0xe] }
  0x9e   : > { %v1175_v33 = vsel %vm435_vm0, %v1172_v21, %v1174_v59  ;;  %v1209_v37 = vadd.f32 %v1173_v30, %v1069_v29  ;;  %v1311_v38 = vrot.slane %v1251_v31, 2  ;;  %v322_v39 = vunpack.c.h.bf16 %v305_v14 }
  0x9f   : > { %v341_v42 = vmul.f32 %v2313_v13, %v321_v62  ;;  %v1210_v8 = vadd.f32 %v1175_v33, %v1070_v3  ;;  %v1315_v43 = vsel %vm576_vm1, %v1312_v34, %v1314_v41  ;;  %v378_v44 = vunpack.c.l.bf16 %v370_v32  ;;  %v1817_v32 = vld [vmem:[%s2300_s22 + $0x3c] sm:$0xff]  }
  0xa0   : > { %v396_v45 = vmul.f32 %v2317_v15, %v321_v62  ;;  %v1313_v53 = vsel %vm576_vm1, %v1311_v38, %v1312_v34  ;;  %v342_v46 = vmul.f32 %v2313_v13, %v322_v39  ;;  %v397_v47 = vmul.f32 %v2317_v15, %v322_v39 }
  0xa1   : > { %v519_v48 = vunpack.c.l.bf16 %v511_v36  ;;  %v1349_v18 = vadd.f32 %v1313_v53, %v1209_v37  ;;  %v1350_v50 = vadd.f32 %v1315_v43, %v1210_v8  ;;  %v398_v51 = vmul.f32 %v2317_v15, %v378_v44  ;;  %v1830_v36 = vld [vmem:[%s2300_s22 + $0x44] sm:$0x1] }
  0xa2   : > { %v451_v54 = vrot.slane %v396_v45, 1  ;;  %v452_v55 = vrot.slane %v397_v47, 1  ;;  %v538_v61 = vmul.f32 %v2322_v20, %v322_v39  ;;  %v539_v63 = vmul.f32 %v2322_v20, %v378_v44 }
  0xa3   : > { %v537_v60 = vmul.f32 %v2322_v20, %v519_v48  ;;  %v1372_v0 = vmul.f32 %v2436_v10, %v1349_v18  ;;  %v1373_v1 = vmul.f32 %v2436_v10, %v1350_v50  ;;  %v454_v2 = vrot.slane %v398_v51, 1 }
  0xa4   : > { %v1887_v4 = vunpack.c.l.bf16 %v1917_v49  ;;  %v453_v5 = vsel %vm435_vm0, %v451_v54, %v452_v55  ;;  %v593_v12 = vrot.slane %v538_v61, 2  ;;  %v595_v7 = vrot.slane %v539_v63, 2  ;;  %v1838_v54 = vld [vmem:[%s2300_s22 + $0x3c] sm:$0xe] }
  0xa5   : > { %v592_v6 = vrot.slane %v537_v60, 2  ;;  %v1395_v9 = vadd.f32 %v2445_v24, %v1372_v0  ;;  %v1396_v11 = vadd.f32 %v2445_v24, %v1373_v1  ;;  %v455_v16 = vsel %vm435_vm0, %v452_v55, %v454_v2 }
  0xa6   : > { %v498_v14 = vadd.f32 %v453_v5, %v341_v42  ;;  %v499_v19 = vadd.f32 %v455_v16, %v342_v46  ;;  %v596_v21 = vsel %vm576_vm1, %v593_v12, %v595_v7  ;;  %v1888_v23 = vunpack.c.h.bf16 %v1917_v49  ;;  %v313_v5 = vld [vmem:[%s2300_s22 + $0x54] sm:$0xff]  }
  0xa7   : > { %v594_v10 = vsel %vm576_vm1, %v592_v6, %v593_v12  ;;  %v1411_v59 = vmax.f32 %v1395_v9, 0.0  ;;  %v1412_v27 = vmax.f32 %v1396_v11, 0.0  ;;  %v695_v29 = vmul.f32 %v1887_v4, %v2342_v40 }
  0xa8   : > { %v639_v28 = vadd.f32 %v594_v10, %v498_v14  ;;  %v640_v30 = vadd.f32 %v596_v21, %v499_v19  ;;  %v696_v24 = vmul.f32 %v1888_v23, %v2342_v40  ;;  %v732_v31 = vunpack.c.l.bf16 %v1796_v17 }
  0xa9   : > { %v750_v62 = vmul.f32 %v1887_v4, %v2360_v57  ;;  %v1421_v3 = vpack.c.bf16 %v1412_v27, %v1411_v59  ;;  %v751_v34 = vmul.f32 %v1888_v23, %v2360_v57  ;;  %v872_v41 = vunpack.c.l.bf16 %v1804_v25  ;;  %v374_v25 = vld [vmem:[%s2300_s22 + $0x5c] sm:$0x1] }
  0xaa   : > { %v711_v33 = vadd.f32 %v695_v29, %v639_v28  ;;  %v712_v37 = vadd.f32 %v696_v24, %v640_v30  ;;  %v752_v38 = vmul.f32 %v2360_v57, %v732_v31  ;;  %v891_v42 = vmul.f32 %v1888_v23, %v2363_v58 }
  0xab   : > { %v804_v39 = vrot.slane %v750_v62, 1  ;;  %1968 = vmatprep.mubr.bf16.mxu1 %v1421_v3  ;;  %v805_v8 = vrot.slane %v751_v34, 1  ;;  %v890_v43 = vmul.f32 %v2363_v58, %v872_v41  ;;  %v892_v44 = vmul.f32 %v2363_v58, %v732_v31 }
  0xac   : > { %v1027_v45 = vunpack.c.l.bf16 %v1817_v32  ;;  %v807_v53 = vrot.slane %v752_v38, 1  ;;  %v945_v46 = vrot.slane %v891_v42, 2  ;;  %v1028_v47 = vunpack.c.h.bf16 %v1817_v32  ;;  %v515_v32 = vld [vmem:[%s2300_s22 + $0x54] sm:$0xe] }
  0xad   : > { %v1084_v48 = vunpack.c.l.bf16 %v1830_v36  ;;  %v806_v49 = vsel %vm435_vm0, %v804_v39, %v805_v8  ;;  %v944_v18 = vrot.slane %v890_v43, 2  ;;  %v947_v50 = vrot.slane %v892_v44, 2 }
  0xae   : > { %v1047_v51 = vmul.f32 %v2387_v22, %v1027_v45  ;;  %v808_v55 = vsel %vm435_vm0, %v805_v8, %v807_v53  ;;  %v851_v60 = vadd.f32 %v806_v49, %v711_v33  ;;  %v1048_v61 = vmul.f32 %v2387_v22, %v1028_v47 }
  0xaf   : > { %v1102_v63 = vmul.f32 %v2403_v35, %v1027_v45  ;;  %v852_v0 = vadd.f32 %v808_v55, %v712_v37  ;;  %v946_v1 = vsel %vm576_vm1, %v944_v18, %v945_v46  ;;  %v948_v2 = vsel %vm576_vm1, %v945_v46, %v947_v50 }
  0xb0   : > { %v1103_v4 = vmul.f32 %v2403_v35, %v1028_v47  ;;  %v991_v6 = vadd.f32 %v946_v1, %v851_v60  ;;  %v1104_v12 = vmul.f32 %v2403_v35, %v1084_v48  ;;  %v1224_v9 = vunpack.c.l.bf16 %v1838_v54  ;;  %v1800_v60 = vld [vmem:[%s2300_s22 + $0x68] sm:$0x1] }
  0xb1   : > { %v1156_v7 = vrot.slane %v1102_v63, 1  ;;  %v992_v11 = vadd.f32 %v948_v2, %v852_v0  ;;  %v1243_v14 = vmul.f32 %v2715_v26, %v1028_v47  ;;  %v1244_v17 = vmul.f32 %v2715_v26, %v1084_v48  ;;  %v1808_v2 = vld [vmem:[%s2300_s22 + $0x60] sm:$0xe] }
  0xb2   : > { %v1157_v16 = vrot.slane %v1103_v4, 1  ;;  %v1063_v19 = vadd.f32 %v1047_v51, %v991_v6  ;;  %v1159_v10 = vrot.slane %v1104_v12, 1  ;;  %v1242_v21 = vmul.f32 %v2715_v26, %v1224_v9 }
  0xb3   : > { %v329_v23 = vunpack.c.l.bf16 %v313_v5  ;;  %v1064_v59 = vadd.f32 %v1048_v61, %v992_v11  ;;  %v1297_v28 = vrot.slane %v1243_v14, 2  ;;  %v1299_v29 = vrot.slane %v1244_v17, 2  ;;  %v2798_v61 = vld [vmem:[%s2969_s3] ss:$0 sm:$0xff] }
  0xb4   : > { %v1158_v27 = vsel %vm435_vm0, %v1156_v7, %v1157_v16  ;;  %v1160_v30 = vsel %vm435_vm0, %v1157_v16, %v1159_v10  ;;  %v1296_v31 = vrot.slane %v1242_v21, 2  ;;  %v330_v62 = vunpack.c.h.bf16 %v313_v5  ;;  %v1825_v21 = vld [vmem:[%s2300_s22 + $0x6c] sm:$0xff]  }
  0xb5   : > { %v1203_v24 = vadd.f32 %v1158_v27, %v1063_v19  ;;  %v1204_v3 = vadd.f32 %v1160_v30, %v1064_v59  ;;  %v1300_v33 = vsel %vm576_vm1, %v1297_v28, %v1299_v29  ;;  %v349_v34 = vmul.f32 %v2313_v13, %v329_v23 }
  0xb6   : > { %v382_v41 = vunpack.c.l.bf16 %v374_v25  ;;  %v1298_v36 = vsel %vm576_vm1, %v1296_v31, %v1297_v28  ;;  %v350_v37 = vmul.f32 %v2313_v13, %v330_v62  ;;  %v408_v38 = vmul.f32 %v2317_v15, %v329_v23  ;;  %v2786_v13 = vld [vmem:[%s2968_s2] ss:$0 sm:$0xff] }
  0xb7   : > { %v409_v39 = vmul.f32 %v2317_v15, %v330_v62  ;;  %v1343_v42 = vadd.f32 %v1298_v36, %v1203_v24  ;;  %v1344_v8 = vadd.f32 %v1300_v33, %v1204_v3  ;;  %v523_v44 = vunpack.c.l.bf16 %v515_v32  ;;  %v1834_v32 = vld [vmem:[%s2300_s22 + $0x74] sm:$0x1] }
  0xb8   : > { %v410_v43 = vmul.f32 %v2317_v15, %v382_v41  ;;  %v471_v45 = vrot.slane %v408_v38, 1  ;;  %v550_v46 = vmul.f32 %v2322_v20, %v330_v62  ;;  %v551_v47 = vmul.f32 %v2322_v20, %v382_v41 }
  0xb9   : > { %v472_v53 = vrot.slane %v409_v39, 1  ;;  %v1366_v48 = vmul.f32 %v2786_v13, %v1343_v42  ;;  %v1367_v49 = vmul.f32 %v2786_v13, %v1344_v8  ;;  %v549_v15 = vmul.f32 %v2322_v20, %v523_v44  ;;  %v1842_v39 = vld [vmem:[%s2300_s22 + $0x6c] sm:$0xe]  ;;  %s283_s22 = sand.u32 1, %s2141_s25  }
  0xba   : > { %v474_v18 = vrot.slane %v410_v43, 1  ;;  %v613_v51 = vrot.slane %v550_v46, 2  ;;  %v615_v54 = vrot.slane %v551_v47, 2  ;;  %v703_v55 = vmul.f32 %v2693_v52, %v2342_v40  ;;  %s1770_s9 = sshll.u32 %s283_s22, 7  ;;  %s2915_s23 = scalar_lea.sflag [#allocation3], %s283_s22 }
  0xbb   : > { %v473_v50 = vsel %vm435_vm0, %v471_v45, %v472_v53  ;;  %v1389_v63 = vadd.f32 %v2798_v61, %v1366_v48  ;;  %v1390_v0 = vadd.f32 %v2798_v61, %v1367_v49  ;;  %v612_v5 = vrot.slane %v549_v15, 2  ;;  %s2858_s13 = scalar_lea.vmem [#allocation2], %s1770_s9 }
  0xbc   : > { %v475_v20 = vsel %vm435_vm0, %v472_v53, %v474_v18  ;;  %v506_v1 = vadd.f32 %v473_v50, %v349_v34  ;;  %v616_v6 = vsel %vm576_vm1, %v613_v51, %v615_v54  ;;  %v704_v12 = vmul.f32 %v2696_v56, %v2342_v40  ;;  %s1679_s28 = sshll.u32 %s2858_s13, 4  ;;  %s2909_s28 = int_to_ptr.vmem [resolvable:$true] %s1679_s28 }
  0xbd   : > { %v507_v4 = vadd.f32 %v475_v20, %v350_v37  ;;  %v1405_v7 = vmax.f32 %v1389_v63, 0.0  ;;  %v1406_v9 = vmax.f32 %v1390_v0, 0.0  ;;  %v736_v11 = vunpack.c.l.bf16 %v1800_v60  ;;  %s2073_s9 = scalar_lea.vmem %s2909_s28, 2048  ;;  %p2080_p2 = scmp.lt.s32.totalorder %s2909_s28, %s2078_s10 }
  0xbe   : > { %v762_v16 = vmul.f32 %v2693_v52, %v2360_v57  ;;  %v614_v14 = vsel %vm576_vm1, %v612_v5, %v613_v51  ;;  %v763_v19 = vmul.f32 %v2696_v56, %v2360_v57  ;;  %v876_v10 = vunpack.c.l.bf16 %v1808_v2  ;;  %p2074_p13 = scmp.ne.s32.totalorder %s2909_s28, %s2073_s9  ;;  %p2081_p4 = scmp.lt.s32.totalorder %s2079_s17, %s2073_s9 }
  0xbf   : > { %v648_v17 = vadd.f32 %v616_v6, %v507_v4  ;;  %v1418_v23 = vpack.c.bf16 %v1406_v9, %v1405_v7  ;;  %v647_v25 = vadd.f32 %v614_v14, %v506_v1  ;;  %v764_v59 = vmul.f32 %v2360_v57, %v736_v11 }
  0xc0   : > { %v824_v40 = vrot.slane %v762_v16, 1  ;;  %v825_v28 = vrot.slane %v763_v19, 1  ;;  %v902_v29 = vmul.f32 %v2363_v58, %v876_v10  ;;  %v903_v52 = vmul.f32 %v2696_v56, %v2363_v58  ;;  %v2844_v19 = vld [vmem:[%s2971_s5] ss:$0 sm:$0xff]  ;;  %p2075_p0 = pnand %p2074_p13, %p2261_p3  ;;  %p2082_p5 = por %p2081_p4, %p2080_p2 }
  0xc1   : > { %v720_v27 = vadd.f32 %v704_v12, %v648_v17  ;;  %1961 = vmatmul.mubr.bf16.gmra.mxu0 %v1418_v23  ;;  %v719_v30 = vadd.f32 %v703_v55, %v647_v25  ;;  %v827_v24 = vrot.slane %v764_v59, 1  ;;  %v904_v31 = vmul.f32 %v2363_v58, %v736_v11 }
  0xc2   : > { %v1035_v62 = vunpack.c.l.bf16 %v1825_v21  ;;  %v826_v3 = vsel %vm435_vm0, %v824_v40, %v825_v28  ;;  %v964_v33 = vrot.slane %v902_v29, 2  ;;  %v965_v57 = vrot.slane %v903_v52, 2  ;;  %p2076_p1 = pneg %p2075_p0 }
  0xc3   : > { %v1036_v34 = vunpack.c.h.bf16 %v1825_v21  ;;  %v828_v41 = vsel %vm435_vm0, %v825_v28, %v827_v24  ;;  %v859_v36 = vadd.f32 %v826_v3, %v719_v30  ;;  %v967_v37 = vrot.slane %v904_v31, 2  ;;  %v2849_v21 = vld [vmem:[%s2972_s6] ss:$0 sm:$0xff] }
  0xc4   : > { %v1055_v38 = vmul.f32 %v2387_v22, %v1035_v62  ;;  %v860_v56 = vadd.f32 %v828_v41, %v720_v27  ;;  %v966_v42 = vsel %vm576_vm1, %v964_v33, %v965_v57  ;;  %v1088_v58 = vunpack.c.l.bf16 %v1834_v32  ;;  %p2083_p6 = pnand %p2082_p5, %p2076_p1 }
  0xc5   : > { %v1056_v8 = vmul.f32 %v2387_v22, %v1036_v34  ;;  %v968_v43 = vsel %vm576_vm1, %v965_v57, %v967_v37  ;;  %v999_v44 = vadd.f32 %v966_v42, %v859_v36  ;;  %v1114_v45 = vmul.f32 %v2403_v35, %v1035_v62 }
  0xc6   : > { %v1115_v53 = vmul.f32 %v2403_v35, %v1036_v34  ;;  %v1000_v46 = vadd.f32 %v968_v43, %v860_v56  ;;  %v1116_v47 = vmul.f32 %v2403_v35, %v1088_v58  ;;  %v1228_v48 = vunpack.c.l.bf16 %v1842_v39 }
  0xc7   : > { %v1255_v49 = vmul.f32 %v2715_v26, %v1036_v34  ;;  %v1071_v18 = vadd.f32 %v1055_v38, %v999_v44  ;;  %v1176_v15 = vrot.slane %v1114_v45, 1  ;;  %v1256_v51 = vmul.f32 %v2715_v26, %v1088_v58 }
  0xc8   : > { %v1177_v50 = vrot.slane %v1115_v53, 1  ;;  %v1072_v22 = vadd.f32 %v1056_v8, %v1000_v46  ;;  %v1179_v54 = vrot.slane %v1116_v47, 1  ;;  %v1254_v55 = vmul.f32 %v2715_v26, %v1228_v48 }
  0xc9   : > { %v1317_v60 = vrot.slane %v1255_v49, 2  ;;  %v1319_v0 = vrot.slane %v1256_v51, 2 }
  0xca   : > { %v1178_v63 = vsel %vm435_vm0, %v1176_v15, %v1177_v50  ;;  %v1180_v20 = vsel %vm435_vm0, %v1177_v50, %v1179_v54  ;;  %v1316_v1 = vrot.slane %v1254_v55, 2 }
  0xcb   : > { %v1211_v35 = vadd.f32 %v1178_v63, %v1071_v18  ;;  %v1212_v2 = vadd.f32 %v1180_v20, %v1072_v22  ;;  %v1320_v4 = vsel %vm576_vm1, %v1317_v60, %v1319_v0 }
  0xcc   : > { %v1318_v5 = vsel %vm576_vm1, %v1316_v1, %v1317_v60 }
  0xcd   : > { %v1351_v6 = vadd.f32 %v1318_v5, %v1211_v35  ;;  %v1352_v12 = vadd.f32 %v1320_v4, %v1212_v2 }
  0xcf   : > { %v1374_v7 = vmul.f32 %v2786_v13, %v1351_v6  ;;  %v1375_v26 = vmul.f32 %v2786_v13, %v1352_v12 }
  0xd1   : > { %v1397_v9 = vadd.f32 %v2798_v61, %v1374_v7  ;;  %v1398_v11 = vadd.f32 %v2798_v61, %v1375_v26 }
  0xd3   : > { %v1413_v16 = vmax.f32 %v1397_v9, 0.0  ;;  %v1414_v14 = vmax.f32 %v1398_v11, 0.0 }
  0xd5   : > { %v1422_v17 = vpack.c.bf16 %v1414_v14, %v1413_v16 }
  0xd7   : > { %1969 = vmatmul.mubr.bf16.gmra.mxu1 %v1422_v17 }
 0x12b   : > { %v1958_v10 = vpop.f32.mrf.mxu0 }
 0x12c   : > { %v1593_v13 = vmul.f32 %v1958_v10, %v2844_v19 }
 0x12d   : > { %v1521_v61 = vpop.f32.mrf.mxu0 }
 0x12e   : > { %v1616_v23 = vadd.f32 %v2849_v21, %v1593_v13  ;;  %v1591_v25 = vmul.f32 %v2844_v19, %v1521_v61 }
 0x12f   : > { %v1959_v59 = vpop.f32.mrf.mxu0 }
 0x130   : > { %v1632_v40 = vmax.f32 %v1616_v23, 0.0  ;;  %v1614_v27 = vadd.f32 %v2849_v21, %v1591_v25  ;;  %v1594_v28 = vmul.f32 %v1959_v59, %v2844_v19 }
 0x131   : > { %v1524_v29 = vpop.f32.mrf.mxu0 }
 0x132   : > { %1648 = vst [vmem:[%s2858_s13 + $0x10] sm:$0xff] %v1632_v40  ;;  %v1630_v52 = vmax.f32 %v1614_v27, 0.0  ;;  %v1617_v30 = vadd.f32 %v2849_v21, %v1594_v28  ;;  %v1592_v24 = vmul.f32 %v2844_v19, %v1524_v29 }
 0x134   : > { %1646 = vst [vmem:[%s2858_s13] sm:$0xff] %v1630_v52  ;;  %v1633_v31 = vmax.f32 %v1617_v30, 0.0  ;;  %v1615_v62 = vadd.f32 %v2849_v21, %v1592_v24 }
 0x136   : > { %1649 = vst [vmem:[%s2858_s13 + $0x18] sm:$0xff] %v1633_v31  ;;  %v1631_v32 = vmax.f32 %v1615_v62, 0.0 }
 0x138   : > { %1647 = vst [vmem:[%s2858_s13 + $0x8] sm:$0xff] %v1631_v32 }
 0x140   : > { %v1966_v3 = vpop.f32.mrf.mxu1 }
 0x141   : > { %v1601_v33 = vmul.f32 %v1966_v3, %v2844_v19 }
 0x142   : > { %v1553_v57 = vpop.f32.mrf.mxu1 }
 0x143   : > { %v1624_v34 = vadd.f32 %v2849_v21, %v1601_v33  ;;  %v1599_v41 = vmul.f32 %v2844_v19, %v1553_v57 }
 0x144   : > { %v1967_v36 = vpop.f32.mrf.mxu1 }
 0x145   : > { %v1640_v37 = vmax.f32 %v1624_v34, 0.0  ;;  %v1622_v38 = vadd.f32 %v2849_v21, %v1599_v41  ;;  %v1602_v39 = vmul.f32 %v1967_v36, %v2844_v19 }
 0x146   : > { %v1556_v56 = vpop.f32.mrf.mxu1 }
 0x147   : > { %1656 = vst [vmem:[%s2858_s13 + $0x50] sm:$0xff] %v1640_v37  ;;  %v1638_v42 = vmax.f32 %v1622_v38, 0.0  ;;  %v1625_v8 = vadd.f32 %v2849_v21, %v1602_v39  ;;  %v1600_v58 = vmul.f32 %v2844_v19, %v1556_v56 }
 0x149   : > { %1654 = vst [vmem:[%s2858_s13 + $0x40] sm:$0xff] %v1638_v42  ;;  %v1641_v43 = vmax.f32 %v1625_v8, 0.0  ;;  %v1623_v44 = vadd.f32 %v2849_v21, %v1600_v58 }
 0x14b   : > { %1657 = vst [vmem:[%s2858_s13 + $0x58] sm:$0xff] %v1641_v43  ;;  %v1639_v45 = vmax.f32 %v1623_v44, 0.0 }
 0x14d   : > { %1655 = vst [vmem:[%s2858_s13 + $0x48] sm:$0xff] %v1639_v45 }
 0x181   : > { %v1962_v53 = vpop.f32.mrf.mxu0 }
 0x182   : > { %v1597_v46 = vmul.f32 %v1962_v53, %v2844_v19 }
 0x183   : > { %v1537_v47 = vpop.f32.mrf.mxu0 }
 0x184   : > { %v1620_v48 = vadd.f32 %v2849_v21, %v1597_v46  ;;  %v1595_v49 = vmul.f32 %v2844_v19, %v1537_v47 }
 0x185   : > { %v1963_v18 = vpop.f32.mrf.mxu0 }
 0x186   : > { %v1636_v15 = vmax.f32 %v1620_v48, 0.0  ;;  %v1618_v50 = vadd.f32 %v2849_v21, %v1595_v49  ;;  %v1598_v51 = vmul.f32 %v1963_v18, %v2844_v19 }
 0x187   : > { %v1540_v22 = vpop.f32.mrf.mxu0 }
 0x188   : > { %1652 = vst [vmem:[%s2858_s13 + $0x30] sm:$0xff] %v1636_v15  ;;  %v1634_v54 = vmax.f32 %v1618_v50, 0.0  ;;  %v1621_v55 = vadd.f32 %v2849_v21, %v1598_v51  ;;  %v1596_v60 = vmul.f32 %v2844_v19, %v1540_v22 }
 0x18a   : > { %1650 = vst [vmem:[%s2858_s13 + $0x20] sm:$0xff] %v1634_v54  ;;  %v1637_v63 = vmax.f32 %v1621_v55, 0.0  ;;  %v1619_v0 = vadd.f32 %v2849_v21, %v1596_v60 }
 0x18c   : > { %1653 = vst [vmem:[%s2858_s13 + $0x38] sm:$0xff] %v1637_v63  ;;  %v1635_v20 = vmax.f32 %v1619_v0, 0.0 }
 0x18e   : > { %1651 = vst [vmem:[%s2858_s13 + $0x28] sm:$0xff] %v1635_v20 }
 0x197   : > { %v1970_v35 = vpop.f32.mrf.mxu1 }
 0x198   : > { %v1605_v1 = vmul.f32 %v1970_v35, %v2844_v19 }
 0x199   : > { %v1569_v2 = vpop.f32.mrf.mxu1 }
 0x19a   : > { %v1628_v4 = vadd.f32 %v2849_v21, %v1605_v1  ;;  %v1603_v5 = vmul.f32 %v2844_v19, %v1569_v2 }
 0x19b   : > { %v1971_v6 = vpop.f32.mrf.mxu1 }
 0x19c   : > { %v1644_v12 = vmax.f32 %v1628_v4, 0.0  ;;  %v1626_v7 = vadd.f32 %v2849_v21, %v1603_v5  ;;  %v1606_v26 = vmul.f32 %v1971_v6, %v2844_v19 }
 0x19d   : > { %v1572_v9 = vpop.f32.mrf.mxu1 }
 0x19e   : > { %1660 = vst [vmem:[%s2858_s13 + $0x70] sm:$0xff] %v1644_v12  ;;  %v1642_v11 = vmax.f32 %v1626_v7, 0.0  ;;  %v1629_v16 = vadd.f32 %v2849_v21, %v1606_v26  ;;  %v1604_v14 = vmul.f32 %v2844_v19, %v1572_v9 }
 0x1a0   : > { %1658 = vst [vmem:[%s2858_s13 + $0x60] sm:$0xff] %v1642_v11  ;;  %v1645_v17 = vmax.f32 %v1629_v16, 0.0  ;;  %v1627_v10 = vadd.f32 %v2849_v21, %v1604_v14 }
 0x1a2   : > { %1661 = vst [vmem:[%s2858_s13 + $0x78] sm:$0xff] %v1645_v17  ;;  %v1643_v13 = vmax.f32 %v1627_v10, 0.0 }
 0x1a4   : > { %1659 = vst [vmem:[%s2858_s13 + $0x68] sm:$0xff] %v1643_v13 }
 0x1a5   : > { %2086 = shalt.err (!%p2083_p6)
}
 0x1a6   : > { %s2087_s22 = scalar_lea.hbm %s2907_s21, 2048  ;;  %s2091_s18 = scalar_lea.hbm %s2973_s7, 8192 }
 0x1a7   : > { %p2088_p7 = scmp.ne.s32.totalorder %s2907_s21, %s2087_s22  ;;  %p2092_p11 = scmp.lt.s32.totalorder %s2907_s21, %s2973_s7 }
 0x1a8   : > { %p2093_p12 = scmp.lt.s32.totalorder %s2091_s18, %s2087_s22 }
 0x1a9   : > { %p2089_p9 = pnand %p2088_p7, %p2261_p3 }
 0x1aa   : > { %p2094_p13 = por %p2093_p12, %p2092_p11 }
 0x1ab   : > { %p2090_p10 = pneg %p2089_p9 }
 0x1ad   : > { %p2095_p0 = pnand %p2094_p13, %p2090_p10 }
 0x1af   : > { %2098 = shalt.err (!%p2095_p0)
}
 0x1b0   : > { %s2168_s9 = smov 128   ;;  %s2169_s10 = smov 8  }
 0x1b1   : > { %1989 = dma.vmem_to_hbm [thread:$0]  (%p2261_p3), %s2909_s28, 2048, %s2907_s21, %s2915_s23, %s2168_s9, %s2168_s9, %s2169_s10  }
 0x1b2 PF: > { %p1995_p1 = scmp.ge.s32.totalorder %s2165_s8, 2  ;;  %s1694_s17 = sand.u32 1, %s2137_s24  }
 0x1b3   : > { %s1695_s22 = scalar_lea.sflag [#allocation3], %s1694_s17 }
 0x1b4   : > { %p1992_p2 = pnand %p1995_p1, %p2270_p8 }
 0x1b6   : > { %p1993_p4 = pneg %p1992_p2 }
 0x1b8   : > { %2132 = dma.done.wait (%p1993_p4), %s1695_s22, 2048  }
 0x1b9   : > { %2134 = vsyncadd (%p1993_p4), %s1695_s22, 4294965248  ;;  %s20_s8 = sadd.s32 1, %s2165_s8   ;;  %s2976_s24 = smov %s2141_s25 }
 0x1ba   : > { %p17_p5 = scmp.ge.s32.totalorder %s20_s8, 6   ;;  %s2977_s25 = smov %s2145_s26 }
 0x1bb   : > { %s2978_s26 = smov %s2279_s19  ;;  %s2979_s27 = smov %s2157_s29 }
 0x1bc   : > { %s2980_s28 = smov %s2161_s30  ;;  %s2981_s29 = smov %s2984_s11 }
 0x1bd   : > { %s2982_s30 = smov %s2988_s12  ;;  %19 = sbr.rel (!%p17_p5) target bundleno = 5 (0x5), region = 86 }
 0x1c2   :  { %1700 = vsyncpa [#allocation3], 1 }
 0x1c3   :  { %1702 = vsyncpa [#allocation3 + $0x1], 1 }

</bundles_post_ra>
